<compile_context>
chip_gen: v6e
topology: v6e:2x2x1
jax: 0.10.0
libtpu: 0.0.40
codegen_flags: <defaults>
</compile_context>

<pallas_src>
import jax
import jax.numpy as jnp
from jax.experimental import pallas as pl
from jax.experimental.pallas import tpu as pltpu

# ----------------------------- config ----------------------------------------
PATCH = 16          # conv kernel (16, 16)
FSTRIDE = 10
TSTRIDE = 10
INPUT_FDIM = 16     # frequency bins -> f_dim = 1
INPUT_TDIM = 46     # time frames    -> t_dim = 4
EMBED_DIM = 32      # small stand-in for 768
NUM_HEADS = 4
HEAD_DIM = EMBED_DIM // NUM_HEADS
MLP_DIM = 4 * EMBED_DIM
DEPTH = 2
LABEL_DIM = 8
BATCH = 2

F_DIM = (INPUT_FDIM - PATCH) // FSTRIDE + 1
T_DIM = (INPUT_TDIM - PATCH) // TSTRIDE + 1
NUM_PATCHES = F_DIM * T_DIM
NUM_TOKENS = NUM_PATCHES + 1   # + appended zero "padding" token
PATCH_K = PATCH * PATCH
LN_EPS = 1e-6

assert EMBED_DIM % NUM_HEADS == 0


# ----------------------------- in-kernel helpers ------------------------------
def _layer_norm(x, g, b, eps=LN_EPS):
    mean = jnp.mean(x, axis=-1, keepdims=True)
    d = x - mean
    var = jnp.mean(d * d, axis=-1, keepdims=True)
    return d * jax.lax.rsqrt(var + eps) * g + b


def _gelu_tanh(x):
    return 0.5 * x * (1.0 + jnp.tanh(
        0.7978845608028654 * (x + 0.044715 * x * x * x)))


# ----------------------------- fused forward kernel ---------------------------
def _ast_fused_kernel(
    patches_ref,                                  # (1, Nt, 256)  (last row zero)
    pproj_w_ref, pproj_b_ref, pos_ref,            # (256, D) (1, D) (Nt, D)
    ln1_g_ref, ln1_b_ref,                         # (L, 1, D)
    qkv_w_ref, qkv_b_ref,                         # (L, D, 3D) (L, 1, 3D)
    aproj_w_ref, aproj_b_ref,                     # (L, D, D)  (L, 1, D)
    ln2_g_ref, ln2_b_ref,                         # (L, 1, D)
    fc1_w_ref, fc1_b_ref,                         # (L, D, H)  (L, 1, H)
    fc2_w_ref, fc2_b_ref,                         # (L, H, D)  (L, 1, D)
    norm_g_ref, norm_b_ref,                       # (1, D)
    hln_g_ref, hln_b_ref,                         # (1, D)
    head_w_ref, head_b_ref,                       # (D, LABEL) (1, LABEL)
    out_ref,                                      # (1, 1, LABEL)
):
    D = EMBED_DIM
    dh = HEAD_DIM
    scale = dh ** -0.5
    f32 = jnp.float32

    # ---- patch embedding: Conv2d(1, D, 16, 16) as flattened matmul ----
    patches = patches_ref[0]                                        # (Nt, 256)
    tok = jnp.dot(patches, pproj_w_ref[...],
                  preferred_element_type=f32) + pproj_b_ref[...]    # (Nt, D)
    # last row must stay the zero "padding" token (mask out the conv bias)
    row = jax.lax.broadcasted_iota(jnp.int32, (NUM_TOKENS, D), 0)
    tok = jnp.where(row < NUM_PATCHES, tok, 0.0)
    x = tok + pos_ref[...]                                          # pos_drop = identity

    # ---- transformer blocks (static unroll; weights stay VMEM resident) ----
    for l in range(DEPTH):
        # --- attention branch ---
        h = _layer_norm(x, ln1_g_ref[l], ln1_b_ref[l])
        qkv = jnp.dot(h, qkv_w_ref[l],
                      preferred_element_type=f32) + qkv_b_ref[l]    # (Nt, 3D)
        attn = None
        for hd in range(NUM_HEADS):
            qs, ks, vs = hd * dh, D + hd * dh, 2 * D + hd * dh
            q = qkv[:, qs:qs + dh]                                  # (Nt, dh)
            k = qkv[:, ks:ks + dh]
            v = qkv[:, vs:vs + dh]
            s = jax.lax.dot_general(q, k, (((1,), (1,)), ((), ())),
                                    preferred_element_type=f32) * scale
            m = jnp.max(s, axis=-1, keepdims=True)
            p = jnp.exp(s - m)
            p = p * pl.reciprocal(jnp.sum(p, axis=-1, keepdims=True), approx=True)
            ho = jnp.dot(p, v, preferred_element_type=f32)          # (Nt, dh)
            # fold each head straight through its slice of the output proj;
            # avoids concatenating heads along the lane axis.
            contrib = jnp.dot(ho, aproj_w_ref[l, hd * dh:(hd + 1) * dh, :],
                              preferred_element_type=f32)           # (Nt, D)
            attn = contrib if attn is None else attn + contrib
        attn = attn + aproj_b_ref[l]
        x = x + attn

        # --- MLP branch ---
        h = _layer_norm(x, ln2_g_ref[l], ln2_b_ref[l])
        h = jnp.dot(h, fc1_w_ref[l], preferred_element_type=f32) + fc1_b_ref[l]
        h = _gelu_tanh(h)
        h = jnp.dot(h, fc2_w_ref[l], preferred_element_type=f32) + fc2_b_ref[l]
        x = x + h

    # ---- final norm, pooling of tokens 0 and 1, mlp_head ----
    x = _layer_norm(x, norm_g_ref[...], norm_b_ref[...])
    pooled = (x[0:1, :] + x[1:2, :]) * 0.5                          # (1, D)
    pooled = _layer_norm(pooled, hln_g_ref[...], hln_b_ref[...])
    logits = jnp.dot(pooled, head_w_ref[...],
                     preferred_element_type=f32) + head_b_ref[...]  # (1, LABEL)
    out_ref[0] = logits.astype(out_ref.dtype)


# ----------------------------- wrapper ----------------------------------------
def ast_forward(x, params):
    """x: (B, T, F) spectrogram -> (B, LABEL_DIM) logits."""
    B = x.shape[0]
    D, H, L = EMBED_DIM, MLP_DIM, DEPTH

    # (B, T, F) -> NCHW (B, 1, F, T), then unfold 16x16 patches in one XLA op.
    x_nchw = jnp.transpose(x[:, None, :, :], (0, 1, 3, 2))          # (B, 1, F, T)
    patches = jax.lax.conv_general_dilated_patches(
        x_nchw, filter_shape=(PATCH, PATCH),
        window_strides=(FSTRIDE, TSTRIDE), padding="VALID",
        dimension_numbers=("NCHW", "OIHW", "NCHW"))                 # (B, 256, f, t)
    patches = jnp.transpose(patches.reshape(B, PATCH_K, NUM_PATCHES),
                            (0, 2, 1))                              # (B, N, 256)
    # append a zero row so the kernel sequence is already NUM_TOKENS long
    patches = jnp.pad(patches, ((0, 0), (0, 1), (0, 0)))            # (B, Nt, 256)

    full2 = lambda b: (0, 0)
    full3 = lambda b: (0, 0, 0)
    in_specs = [
        pl.BlockSpec((1, NUM_TOKENS, PATCH_K), lambda b: (b, 0, 0)),
        pl.BlockSpec((PATCH_K, D), full2),       # proj_w
        pl.BlockSpec((1, D), full2),             # proj_b
        pl.BlockSpec((NUM_TOKENS, D), full2),    # pos_embed
        pl.BlockSpec((L, 1, D), full3),          # ln1_g
        pl.BlockSpec((L, 1, D), full3),          # ln1_b
        pl.BlockSpec((L, D, 3 * D), full3),      # qkv_w
        pl.BlockSpec((L, 1, 3 * D), full3),      # qkv_b
        pl.BlockSpec((L, D, D), full3),          # aproj_w
        pl.BlockSpec((L, 1, D), full3),          # aproj_b
        pl.BlockSpec((L, 1, D), full3),          # ln2_g
        pl.BlockSpec((L, 1, D), full3),          # ln2_b
        pl.BlockSpec((L, D, H), full3),          # fc1_w
        pl.BlockSpec((L, 1, H), full3),          # fc1_b
        pl.BlockSpec((L, H, D), full3),          # fc2_w
        pl.BlockSpec((L, 1, D), full3),          # fc2_b
        pl.BlockSpec((1, D), full2),             # norm_g
        pl.BlockSpec((1, D), full2),             # norm_b
        pl.BlockSpec((1, D), full2),             # head_ln_g
        pl.BlockSpec((1, D), full2),             # head_ln_b
        pl.BlockSpec((D, LABEL_DIM), full2),     # head_w
        pl.BlockSpec((1, LABEL_DIM), full2),     # head_b
    ]

    out = pl.pallas_call(
        _ast_fused_kernel,
        out_shape=jax.ShapeDtypeStruct((B, 1, LABEL_DIM), jnp.float32),
        grid=(B,),
        in_specs=in_specs,
        out_specs=pl.BlockSpec((1, 1, LABEL_DIM), lambda b: (b, 0, 0)),
        compiler_params=pltpu.CompilerParams(
            dimension_semantics=("parallel",)),   # batch -> 2 TCs on v7x
    )(patches,
      params["proj_w"], params["proj_b"], params["pos_embed"],
      params["ln1_g"], params["ln1_b"],
      params["qkv_w"], params["qkv_b"],
      params["aproj_w"], params["aproj_b"],
      params["ln2_g"], params["ln2_b"],
      params["fc1_w"], params["fc1_b"],
      params["fc2_w"], params["fc2_b"],
      params["norm_g"], params["norm_b"],
      params["head_ln_g"], params["head_ln_b"],
      params["head_w"], params["head_b"])
    return out.reshape(B, LABEL_DIM)


# ----------------------------- params -----------------------------------------
def init_params(key):
    def nrm(k, shape, std=0.02):
        return (std * jax.random.normal(k, shape)).astype(jnp.float32)

    D, H = EMBED_DIM, MLP_DIM
    keys = jax.random.split(key, 5 + DEPTH)
    params = {
        "proj_w": nrm(keys[0], (PATCH_K, D)),     # Conv2d(1, D, 16, 16) flattened (K_in, D)
        "proj_b": nrm(keys[1], (1, D)),
        "pos_embed": nrm(keys[2], (NUM_TOKENS, D)),
        "norm_g": jnp.ones((1, D), jnp.float32),
        "norm_b": jnp.zeros((1, D), jnp.float32),
        "head_ln_g": jnp.ones((1, D), jnp.float32),
        "head_ln_b": jnp.zeros((1, D), jnp.float32),
        "head_w": nrm(keys[3], (D, LABEL_DIM)),
        "head_b": nrm(keys[4], (1, LABEL_DIM)),
        # LayerNorm params (per layer, stacked along DEPTH)
        "ln1_g": jnp.ones((DEPTH, 1, D), jnp.float32),
        "ln1_b": jnp.zeros((DEPTH, 1, D), jnp.float32),
        "ln2_g": jnp.ones((DEPTH, 1, D), jnp.float32),
        "ln2_b": jnp.zeros((DEPTH, 1, D), jnp.float32),
        "fc1_b": jnp.zeros((DEPTH, 1, H), jnp.float32),
        "fc2_b": jnp.zeros((DEPTH, 1, D), jnp.float32),
    }
    qkv_w, qkv_b, aproj_w, aproj_b, fc1_w, fc2_w = [], [], [], [], [], []
    for d in range(DEPTH):
        bk = jax.random.split(keys[5 + d], 6)
        qkv_w.append(nrm(bk[0], (D, 3 * D)))
        qkv_b.append(nrm(bk[1], (1, 3 * D)))
        aproj_w.append(nrm(bk[2], (D, D)))
        aproj_b.append(nrm(bk[3], (1, D)))
        fc1_w.append(nrm(bk[4], (D, H)))
        fc2_w.append(nrm(bk[5], (H, D)))
    params.update({
        "qkv_w": jnp.stack(qkv_w), "qkv_b": jnp.stack(qkv_b),
        "aproj_w": jnp.stack(aproj_w), "aproj_b": jnp.stack(aproj_b),
        "fc1_w": jnp.stack(fc1_w), "fc2_w": jnp.stack(fc2_w),
    })
    return params


# ----------------------------- main --------------------------------------------
if __name__ == "__main__":
    key = jax.random.PRNGKey(0)
    k_params, k_x = jax.random.split(key)
    params = init_params(k_params)
    x = jax.random.normal(k_x, (BATCH, INPUT_TDIM, INPUT_FDIM), dtype=jnp.float32)

    fwd = jax.jit(ast_forward)
    logits = fwd(x, params)
    jax.block_until_ready(logits)
    assert logits.shape == (BATCH, LABEL_DIM)
    assert bool(jnp.all(jnp.isfinite(logits)))
    print("KERNEL_OK")
</pallas_src>

<mosaic_0001>
module attributes {stable_mosaic.version = 11 : i64} {
  func.func @_ast_fused_kernel(%arg0: i32, %arg1: memref<1x5x256xf32, #tpu.memory_space<vmem>>, %arg2: memref<256x32xf32, #tpu.memory_space<vmem>>, %arg3: memref<1x32xf32, #tpu.memory_space<vmem>>, %arg4: memref<5x32xf32, #tpu.memory_space<vmem>>, %arg5: memref<2x1x32xf32, #tpu.memory_space<vmem>>, %arg6: memref<2x1x32xf32, #tpu.memory_space<vmem>>, %arg7: memref<2x32x96xf32, #tpu.memory_space<vmem>>, %arg8: memref<2x1x96xf32, #tpu.memory_space<vmem>>, %arg9: memref<2x32x32xf32, #tpu.memory_space<vmem>>, %arg10: memref<2x1x32xf32, #tpu.memory_space<vmem>>, %arg11: memref<2x1x32xf32, #tpu.memory_space<vmem>>, %arg12: memref<2x1x32xf32, #tpu.memory_space<vmem>>, %arg13: memref<2x32x128xf32, #tpu.memory_space<vmem>>, %arg14: memref<2x1x128xf32, #tpu.memory_space<vmem>>, %arg15: memref<2x128x32xf32, #tpu.memory_space<vmem>>, %arg16: memref<2x1x32xf32, #tpu.memory_space<vmem>>, %arg17: memref<1x32xf32, #tpu.memory_space<vmem>>, %arg18: memref<1x32xf32, #tpu.memory_space<vmem>>, %arg19: memref<1x32xf32, #tpu.memory_space<vmem>>, %arg20: memref<1x32xf32, #tpu.memory_space<vmem>>, %arg21: memref<32x8xf32, #tpu.memory_space<vmem>>, %arg22: memref<1x8xf32, #tpu.memory_space<vmem>>, %arg23: memref<1x1x8xf32, #tpu.memory_space<vmem>>) attributes {dimension_semantics = [#tpu.dimension_semantics<parallel>], iteration_bounds = array<i64: 2>, scalar_prefetch = 0 : i64, scratch_operands = 0 : i64, tpu.core_type = #tpu.core_type<tc>, window_params = [{transform_indices = @transform_0, window_bounds = array<i64: 1, 5, 256>}, {pipeline_mode = #tpu.pipeline_mode<synchronous>, transform_indices = @transform_1, window_bounds = array<i64: 256, 32>}, {pipeline_mode = #tpu.pipeline_mode<synchronous>, transform_indices = @transform_2, window_bounds = array<i64: 1, 32>}, {pipeline_mode = #tpu.pipeline_mode<synchronous>, transform_indices = @transform_3, window_bounds = array<i64: 5, 32>}, {pipeline_mode = #tpu.pipeline_mode<synchronous>, transform_indices = @transform_4, window_bounds = array<i64: 2, 1, 32>}, {pipeline_mode = #tpu.pipeline_mode<synchronous>, transform_indices = @transform_5, window_bounds = array<i64: 2, 1, 32>}, {pipeline_mode = #tpu.pipeline_mode<synchronous>, transform_indices = @transform_6, window_bounds = array<i64: 2, 32, 96>}, {pipeline_mode = #tpu.pipeline_mode<synchronous>, transform_indices = @transform_7, window_bounds = array<i64: 2, 1, 96>}, {pipeline_mode = #tpu.pipeline_mode<synchronous>, transform_indices = @transform_8, window_bounds = array<i64: 2, 32, 32>}, {pipeline_mode = #tpu.pipeline_mode<synchronous>, transform_indices = @transform_9, window_bounds = array<i64: 2, 1, 32>}, {pipeline_mode = #tpu.pipeline_mode<synchronous>, transform_indices = @transform_10, window_bounds = array<i64: 2, 1, 32>}, {pipeline_mode = #tpu.pipeline_mode<synchronous>, transform_indices = @transform_11, window_bounds = array<i64: 2, 1, 32>}, {pipeline_mode = #tpu.pipeline_mode<synchronous>, transform_indices = @transform_12, window_bounds = array<i64: 2, 32, 128>}, {pipeline_mode = #tpu.pipeline_mode<synchronous>, transform_indices = @transform_13, window_bounds = array<i64: 2, 1, 128>}, {pipeline_mode = #tpu.pipeline_mode<synchronous>, transform_indices = @transform_14, window_bounds = array<i64: 2, 128, 32>}, {pipeline_mode = #tpu.pipeline_mode<synchronous>, transform_indices = @transform_15, window_bounds = array<i64: 2, 1, 32>}, {pipeline_mode = #tpu.pipeline_mode<synchronous>, transform_indices = @transform_16, window_bounds = array<i64: 1, 32>}, {pipeline_mode = #tpu.pipeline_mode<synchronous>, transform_indices = @transform_17, window_bounds = array<i64: 1, 32>}, {pipeline_mode = #tpu.pipeline_mode<synchronous>, transform_indices = @transform_18, window_bounds = array<i64: 1, 32>}, {pipeline_mode = #tpu.pipeline_mode<synchronous>, transform_indices = @transform_19, window_bounds = array<i64: 1, 32>}, {pipeline_mode = #tpu.pipeline_mode<synchronous>, transform_indices = @transform_20, window_bounds = array<i64: 32, 8>}, {pipeline_mode = #tpu.pipeline_mode<synchronous>, transform_indices = @transform_21, window_bounds = array<i64: 1, 8>}, {transform_indices = @transform_22, window_bounds = array<i64: 1, 1, 8>}]} {
    %c0 = arith.constant 0 : index
    %c0_0 = arith.constant 0 : index
    %c0_1 = arith.constant 0 : index
    %0 = vector.load %arg1[%c0, %c0_0, %c0_1] : memref<1x5x256xf32, #tpu.memory_space<vmem>>, vector<1x5x256xf32>
    %1 = vector.shape_cast %0 : vector<1x5x256xf32> to vector<5x256xf32>
    %c0_2 = arith.constant 0 : index
    %c0_3 = arith.constant 0 : index
    %2 = vector.load %arg2[%c0_2, %c0_3] : memref<256x32xf32, #tpu.memory_space<vmem>>, vector<256x32xf32>
    %cst = arith.constant dense<0.000000e+00> : vector<5x32xf32>
    %3 = tpu.matmul %1, %2, %cst {dimension_numbers = #tpu.dot_dimension_numbers<[1], [0], [0], [1], [0, 0, 1, 1], [], []>} : vector<5x256xf32>, vector<256x32xf32>, vector<5x32xf32> -> vector<5x32xf32>
    %c0_4 = arith.constant 0 : index
    %c0_5 = arith.constant 0 : index
    %4 = vector.load %arg3[%c0_4, %c0_5] : memref<1x32xf32, #tpu.memory_space<vmem>>, vector<1x32xf32>
    %5 = vector.broadcast %4 : vector<1x32xf32> to vector<5x32xf32>
    %6 = arith.addf %3, %5 : vector<5x32xf32>
    %7 = tpu.iota {dimensions = array<i32: 0>} : vector<5x32xi32>
    %c4_i32 = arith.constant 4 : i32
    %8 = vector.broadcast %c4_i32 : i32 to vector<5x32xi32>
    %9 = arith.cmpi slt, %7, %8 : vector<5x32xi32>
    %cst_6 = arith.constant 0.000000e+00 : f32
    %10 = vector.broadcast %cst_6 : f32 to vector<5x32xf32>
    %11 = arith.select %9, %6, %10 : vector<5x32xi1>, vector<5x32xf32>
    %c0_7 = arith.constant 0 : index
    %c0_8 = arith.constant 0 : index
    %12 = vector.load %arg4[%c0_7, %c0_8] : memref<5x32xf32, #tpu.memory_space<vmem>>, vector<5x32xf32>
    %13 = arith.addf %11, %12 : vector<5x32xf32>
    %c0_9 = arith.constant 0 : index
    %c0_10 = arith.constant 0 : index
    %c0_11 = arith.constant 0 : index
    %14 = vector.load %arg5[%c0_9, %c0_10, %c0_11] : memref<2x1x32xf32, #tpu.memory_space<vmem>>, vector<1x1x32xf32>
    %15 = vector.shape_cast %14 : vector<1x1x32xf32> to vector<1x32xf32>
    %c0_12 = arith.constant 0 : index
    %c0_13 = arith.constant 0 : index
    %c0_14 = arith.constant 0 : index
    %16 = vector.load %arg6[%c0_12, %c0_13, %c0_14] : memref<2x1x32xf32, #tpu.memory_space<vmem>>, vector<1x1x32xf32>
    %17 = vector.shape_cast %16 : vector<1x1x32xf32> to vector<1x32xf32>
    %cst_15 = arith.constant dense<0.000000e+00> : vector<5xf32>
    %18 = vector.multi_reduction <add>, %13, %cst_15 [1] : vector<5x32xf32> to vector<5xf32>
    %19 = vector.shape_cast %18 : vector<5xf32> to vector<5x1xf32>
    %cst_16 = arith.constant 3.200000e+01 : f32
    %20 = vector.broadcast %cst_16 : f32 to vector<5x1xf32>
    %21 = arith.divf %19, %20 : vector<5x1xf32>
    %22 = vector.broadcast %21 : vector<5x1xf32> to vector<5x32xf32>
    %23 = arith.subf %13, %22 : vector<5x32xf32>
    %24 = arith.mulf %23, %23 : vector<5x32xf32>
    %cst_17 = arith.constant dense<0.000000e+00> : vector<5xf32>
    %25 = vector.multi_reduction <add>, %24, %cst_17 [1] : vector<5x32xf32> to vector<5xf32>
    %26 = vector.shape_cast %25 : vector<5xf32> to vector<5x1xf32>
    %cst_18 = arith.constant 3.200000e+01 : f32
    %27 = vector.broadcast %cst_18 : f32 to vector<5x1xf32>
    %28 = arith.divf %26, %27 : vector<5x1xf32>
    %cst_19 = arith.constant 9.99999997E-7 : f32
    %29 = vector.broadcast %cst_19 : f32 to vector<5x1xf32>
    %30 = arith.addf %28, %29 : vector<5x1xf32>
    %31 = math.rsqrt %30 : vector<5x1xf32>
    %32 = vector.broadcast %31 : vector<5x1xf32> to vector<5x32xf32>
    %33 = arith.mulf %23, %32 : vector<5x32xf32>
    %34 = vector.broadcast %15 : vector<1x32xf32> to vector<5x32xf32>
    %35 = arith.mulf %33, %34 : vector<5x32xf32>
    %36 = vector.broadcast %17 : vector<1x32xf32> to vector<5x32xf32>
    %37 = arith.addf %35, %36 : vector<5x32xf32>
    %c0_20 = arith.constant 0 : index
    %c0_21 = arith.constant 0 : index
    %c0_22 = arith.constant 0 : index
    %38 = vector.load %arg7[%c0_20, %c0_21, %c0_22] : memref<2x32x96xf32, #tpu.memory_space<vmem>>, vector<1x32x96xf32>
    %39 = vector.shape_cast %38 : vector<1x32x96xf32> to vector<32x96xf32>
    %cst_23 = arith.constant dense<0.000000e+00> : vector<5x96xf32>
    %40 = tpu.matmul %37, %39, %cst_23 {dimension_numbers = #tpu.dot_dimension_numbers<[1], [0], [0], [1], [0, 0, 1, 1], [], []>} : vector<5x32xf32>, vector<32x96xf32>, vector<5x96xf32> -> vector<5x96xf32>
    %c0_24 = arith.constant 0 : index
    %c0_25 = arith.constant 0 : index
    %c0_26 = arith.constant 0 : index
    %41 = vector.load %arg8[%c0_24, %c0_25, %c0_26] : memref<2x1x96xf32, #tpu.memory_space<vmem>>, vector<1x1x96xf32>
    %42 = vector.shape_cast %41 : vector<1x1x96xf32> to vector<1x96xf32>
    %43 = vector.broadcast %42 : vector<1x96xf32> to vector<5x96xf32>
    %44 = arith.addf %40, %43 : vector<5x96xf32>
    %45 = vector.extract_strided_slice %44 {offsets = [0, 0], sizes = [5, 8], strides = [1, 1]} : vector<5x96xf32> to vector<5x8xf32>
    %46 = vector.extract_strided_slice %44 {offsets = [0, 32], sizes = [5, 8], strides = [1, 1]} : vector<5x96xf32> to vector<5x8xf32>
    %47 = vector.extract_strided_slice %44 {offsets = [0, 64], sizes = [5, 8], strides = [1, 1]} : vector<5x96xf32> to vector<5x8xf32>
    %cst_27 = arith.constant dense<0.000000e+00> : vector<5x5xf32>
    %48 = tpu.matmul %45, %46, %cst_27 {dimension_numbers = #tpu.dot_dimension_numbers<[1], [1], [0], [0], [0, 0, 1, 0], [], []>} : vector<5x8xf32>, vector<5x8xf32>, vector<5x5xf32> -> vector<5x5xf32>
    %cst_28 = arith.constant 0.353553385 : f32
    %49 = vector.broadcast %cst_28 : f32 to vector<5x5xf32>
    %50 = arith.mulf %48, %49 : vector<5x5xf32>
    %cst_29 = arith.constant dense<0xFF800000> : vector<5xf32>
    %51 = vector.multi_reduction <maximumf>, %50, %cst_29 [1] : vector<5x5xf32> to vector<5xf32>
    %52 = vector.shape_cast %51 : vector<5xf32> to vector<5x1xf32>
    %53 = vector.broadcast %52 : vector<5x1xf32> to vector<5x5xf32>
    %54 = arith.subf %50, %53 : vector<5x5xf32>
    %55 = math.exp %54 : vector<5x5xf32>
    %cst_30 = arith.constant dense<0.000000e+00> : vector<5xf32>
    %56 = vector.multi_reduction <add>, %55, %cst_30 [1] : vector<5x5xf32> to vector<5xf32>
    %57 = vector.shape_cast %56 : vector<5xf32> to vector<5x1xf32>
    %58 = tpu.reciprocal %57 {approx = true} : vector<5x1xf32> -> vector<5x1xf32>
    %59 = vector.broadcast %58 : vector<5x1xf32> to vector<5x5xf32>
    %60 = arith.mulf %55, %59 : vector<5x5xf32>
    %cst_31 = arith.constant dense<0.000000e+00> : vector<5x8xf32>
    %61 = tpu.matmul %60, %47, %cst_31 {dimension_numbers = #tpu.dot_dimension_numbers<[1], [0], [0], [1], [0, 0, 1, 1], [], []>} : vector<5x5xf32>, vector<5x8xf32>, vector<5x8xf32> -> vector<5x8xf32>
    %c0_32 = arith.constant 0 : index
    %c0_33 = arith.constant 0 : index
    %c0_34 = arith.constant 0 : index
    %62 = vector.load %arg9[%c0_32, %c0_33, %c0_34] : memref<2x32x32xf32, #tpu.memory_space<vmem>>, vector<1x8x32xf32>
    %63 = vector.shape_cast %62 : vector<1x8x32xf32> to vector<8x32xf32>
    %cst_35 = arith.constant dense<0.000000e+00> : vector<5x32xf32>
    %64 = tpu.matmul %61, %63, %cst_35 {dimension_numbers = #tpu.dot_dimension_numbers<[1], [0], [0], [1], [0, 0, 1, 1], [], []>} : vector<5x8xf32>, vector<8x32xf32>, vector<5x32xf32> -> vector<5x32xf32>
    %65 = vector.extract_strided_slice %44 {offsets = [0, 8], sizes = [5, 8], strides = [1, 1]} : vector<5x96xf32> to vector<5x8xf32>
    %66 = vector.extract_strided_slice %44 {offsets = [0, 40], sizes = [5, 8], strides = [1, 1]} : vector<5x96xf32> to vector<5x8xf32>
    %67 = vector.extract_strided_slice %44 {offsets = [0, 72], sizes = [5, 8], strides = [1, 1]} : vector<5x96xf32> to vector<5x8xf32>
    %cst_36 = arith.constant dense<0.000000e+00> : vector<5x5xf32>
    %68 = tpu.matmul %65, %66, %cst_36 {dimension_numbers = #tpu.dot_dimension_numbers<[1], [1], [0], [0], [0, 0, 1, 0], [], []>} : vector<5x8xf32>, vector<5x8xf32>, vector<5x5xf32> -> vector<5x5xf32>
    %cst_37 = arith.constant 0.353553385 : f32
    %69 = vector.broadcast %cst_37 : f32 to vector<5x5xf32>
    %70 = arith.mulf %68, %69 : vector<5x5xf32>
    %cst_38 = arith.constant dense<0xFF800000> : vector<5xf32>
    %71 = vector.multi_reduction <maximumf>, %70, %cst_38 [1] : vector<5x5xf32> to vector<5xf32>
    %72 = vector.shape_cast %71 : vector<5xf32> to vector<5x1xf32>
    %73 = vector.broadcast %72 : vector<5x1xf32> to vector<5x5xf32>
    %74 = arith.subf %70, %73 : vector<5x5xf32>
    %75 = math.exp %74 : vector<5x5xf32>
    %cst_39 = arith.constant dense<0.000000e+00> : vector<5xf32>
    %76 = vector.multi_reduction <add>, %75, %cst_39 [1] : vector<5x5xf32> to vector<5xf32>
    %77 = vector.shape_cast %76 : vector<5xf32> to vector<5x1xf32>
    %78 = tpu.reciprocal %77 {approx = true} : vector<5x1xf32> -> vector<5x1xf32>
    %79 = vector.broadcast %78 : vector<5x1xf32> to vector<5x5xf32>
    %80 = arith.mulf %75, %79 : vector<5x5xf32>
    %cst_40 = arith.constant dense<0.000000e+00> : vector<5x8xf32>
    %81 = tpu.matmul %80, %67, %cst_40 {dimension_numbers = #tpu.dot_dimension_numbers<[1], [0], [0], [1], [0, 0, 1, 1], [], []>} : vector<5x5xf32>, vector<5x8xf32>, vector<5x8xf32> -> vector<5x8xf32>
    %c0_41 = arith.constant 0 : index
    %c8 = arith.constant 8 : index
    %c0_42 = arith.constant 0 : index
    %82 = vector.load %arg9[%c0_41, %c8, %c0_42] : memref<2x32x32xf32, #tpu.memory_space<vmem>>, vector<1x8x32xf32>
    %83 = vector.shape_cast %82 : vector<1x8x32xf32> to vector<8x32xf32>
    %cst_43 = arith.constant dense<0.000000e+00> : vector<5x32xf32>
    %84 = tpu.matmul %81, %83, %cst_43 {dimension_numbers = #tpu.dot_dimension_numbers<[1], [0], [0], [1], [0, 0, 1, 1], [], []>} : vector<5x8xf32>, vector<8x32xf32>, vector<5x32xf32> -> vector<5x32xf32>
    %85 = arith.addf %64, %84 : vector<5x32xf32>
    %86 = vector.extract_strided_slice %44 {offsets = [0, 16], sizes = [5, 8], strides = [1, 1]} : vector<5x96xf32> to vector<5x8xf32>
    %87 = vector.extract_strided_slice %44 {offsets = [0, 48], sizes = [5, 8], strides = [1, 1]} : vector<5x96xf32> to vector<5x8xf32>
    %88 = vector.extract_strided_slice %44 {offsets = [0, 80], sizes = [5, 8], strides = [1, 1]} : vector<5x96xf32> to vector<5x8xf32>
    %cst_44 = arith.constant dense<0.000000e+00> : vector<5x5xf32>
    %89 = tpu.matmul %86, %87, %cst_44 {dimension_numbers = #tpu.dot_dimension_numbers<[1], [1], [0], [0], [0, 0, 1, 0], [], []>} : vector<5x8xf32>, vector<5x8xf32>, vector<5x5xf32> -> vector<5x5xf32>
    %cst_45 = arith.constant 0.353553385 : f32
    %90 = vector.broadcast %cst_45 : f32 to vector<5x5xf32>
    %91 = arith.mulf %89, %90 : vector<5x5xf32>
    %cst_46 = arith.constant dense<0xFF800000> : vector<5xf32>
    %92 = vector.multi_reduction <maximumf>, %91, %cst_46 [1] : vector<5x5xf32> to vector<5xf32>
    %93 = vector.shape_cast %92 : vector<5xf32> to vector<5x1xf32>
    %94 = vector.broadcast %93 : vector<5x1xf32> to vector<5x5xf32>
    %95 = arith.subf %91, %94 : vector<5x5xf32>
    %96 = math.exp %95 : vector<5x5xf32>
    %cst_47 = arith.constant dense<0.000000e+00> : vector<5xf32>
    %97 = vector.multi_reduction <add>, %96, %cst_47 [1] : vector<5x5xf32> to vector<5xf32>
    %98 = vector.shape_cast %97 : vector<5xf32> to vector<5x1xf32>
    %99 = tpu.reciprocal %98 {approx = true} : vector<5x1xf32> -> vector<5x1xf32>
    %100 = vector.broadcast %99 : vector<5x1xf32> to vector<5x5xf32>
    %101 = arith.mulf %96, %100 : vector<5x5xf32>
    %cst_48 = arith.constant dense<0.000000e+00> : vector<5x8xf32>
    %102 = tpu.matmul %101, %88, %cst_48 {dimension_numbers = #tpu.dot_dimension_numbers<[1], [0], [0], [1], [0, 0, 1, 1], [], []>} : vector<5x5xf32>, vector<5x8xf32>, vector<5x8xf32> -> vector<5x8xf32>
    %c0_49 = arith.constant 0 : index
    %c16 = arith.constant 16 : index
    %c0_50 = arith.constant 0 : index
    %103 = vector.load %arg9[%c0_49, %c16, %c0_50] : memref<2x32x32xf32, #tpu.memory_space<vmem>>, vector<1x8x32xf32>
    %104 = vector.shape_cast %103 : vector<1x8x32xf32> to vector<8x32xf32>
    %cst_51 = arith.constant dense<0.000000e+00> : vector<5x32xf32>
    %105 = tpu.matmul %102, %104, %cst_51 {dimension_numbers = #tpu.dot_dimension_numbers<[1], [0], [0], [1], [0, 0, 1, 1], [], []>} : vector<5x8xf32>, vector<8x32xf32>, vector<5x32xf32> -> vector<5x32xf32>
    %106 = arith.addf %85, %105 : vector<5x32xf32>
    %107 = vector.extract_strided_slice %44 {offsets = [0, 24], sizes = [5, 8], strides = [1, 1]} : vector<5x96xf32> to vector<5x8xf32>
    %108 = vector.extract_strided_slice %44 {offsets = [0, 56], sizes = [5, 8], strides = [1, 1]} : vector<5x96xf32> to vector<5x8xf32>
    %109 = vector.extract_strided_slice %44 {offsets = [0, 88], sizes = [5, 8], strides = [1, 1]} : vector<5x96xf32> to vector<5x8xf32>
    %cst_52 = arith.constant dense<0.000000e+00> : vector<5x5xf32>
    %110 = tpu.matmul %107, %108, %cst_52 {dimension_numbers = #tpu.dot_dimension_numbers<[1], [1], [0], [0], [0, 0, 1, 0], [], []>} : vector<5x8xf32>, vector<5x8xf32>, vector<5x5xf32> -> vector<5x5xf32>
    %cst_53 = arith.constant 0.353553385 : f32
    %111 = vector.broadcast %cst_53 : f32 to vector<5x5xf32>
    %112 = arith.mulf %110, %111 : vector<5x5xf32>
    %cst_54 = arith.constant dense<0xFF800000> : vector<5xf32>
    %113 = vector.multi_reduction <maximumf>, %112, %cst_54 [1] : vector<5x5xf32> to vector<5xf32>
    %114 = vector.shape_cast %113 : vector<5xf32> to vector<5x1xf32>
    %115 = vector.broadcast %114 : vector<5x1xf32> to vector<5x5xf32>
    %116 = arith.subf %112, %115 : vector<5x5xf32>
    %117 = math.exp %116 : vector<5x5xf32>
    %cst_55 = arith.constant dense<0.000000e+00> : vector<5xf32>
    %118 = vector.multi_reduction <add>, %117, %cst_55 [1] : vector<5x5xf32> to vector<5xf32>
    %119 = vector.shape_cast %118 : vector<5xf32> to vector<5x1xf32>
    %120 = tpu.reciprocal %119 {approx = true} : vector<5x1xf32> -> vector<5x1xf32>
    %121 = vector.broadcast %120 : vector<5x1xf32> to vector<5x5xf32>
    %122 = arith.mulf %117, %121 : vector<5x5xf32>
    %cst_56 = arith.constant dense<0.000000e+00> : vector<5x8xf32>
    %123 = tpu.matmul %122, %109, %cst_56 {dimension_numbers = #tpu.dot_dimension_numbers<[1], [0], [0], [1], [0, 0, 1, 1], [], []>} : vector<5x5xf32>, vector<5x8xf32>, vector<5x8xf32> -> vector<5x8xf32>
    %c0_57 = arith.constant 0 : index
    %c24 = arith.constant 24 : index
    %c0_58 = arith.constant 0 : index
    %124 = vector.load %arg9[%c0_57, %c24, %c0_58] : memref<2x32x32xf32, #tpu.memory_space<vmem>>, vector<1x8x32xf32>
    %125 = vector.shape_cast %124 : vector<1x8x32xf32> to vector<8x32xf32>
    %cst_59 = arith.constant dense<0.000000e+00> : vector<5x32xf32>
    %126 = tpu.matmul %123, %125, %cst_59 {dimension_numbers = #tpu.dot_dimension_numbers<[1], [0], [0], [1], [0, 0, 1, 1], [], []>} : vector<5x8xf32>, vector<8x32xf32>, vector<5x32xf32> -> vector<5x32xf32>
    %127 = arith.addf %106, %126 : vector<5x32xf32>
    %c0_60 = arith.constant 0 : index
    %c0_61 = arith.constant 0 : index
    %c0_62 = arith.constant 0 : index
    %128 = vector.load %arg10[%c0_60, %c0_61, %c0_62] : memref<2x1x32xf32, #tpu.memory_space<vmem>>, vector<1x1x32xf32>
    %129 = vector.shape_cast %128 : vector<1x1x32xf32> to vector<1x32xf32>
    %130 = vector.broadcast %129 : vector<1x32xf32> to vector<5x32xf32>
    %131 = arith.addf %127, %130 : vector<5x32xf32>
    %132 = arith.addf %13, %131 : vector<5x32xf32>
    %c0_63 = arith.constant 0 : index
    %c0_64 = arith.constant 0 : index
    %c0_65 = arith.constant 0 : index
    %133 = vector.load %arg11[%c0_63, %c0_64, %c0_65] : memref<2x1x32xf32, #tpu.memory_space<vmem>>, vector<1x1x32xf32>
    %134 = vector.shape_cast %133 : vector<1x1x32xf32> to vector<1x32xf32>
    %c0_66 = arith.constant 0 : index
    %c0_67 = arith.constant 0 : index
    %c0_68 = arith.constant 0 : index
    %135 = vector.load %arg12[%c0_66, %c0_67, %c0_68] : memref<2x1x32xf32, #tpu.memory_space<vmem>>, vector<1x1x32xf32>
    %136 = vector.shape_cast %135 : vector<1x1x32xf32> to vector<1x32xf32>
    %cst_69 = arith.constant dense<0.000000e+00> : vector<5xf32>
    %137 = vector.multi_reduction <add>, %132, %cst_69 [1] : vector<5x32xf32> to vector<5xf32>
    %138 = vector.shape_cast %137 : vector<5xf32> to vector<5x1xf32>
    %cst_70 = arith.constant 3.200000e+01 : f32
    %139 = vector.broadcast %cst_70 : f32 to vector<5x1xf32>
    %140 = arith.divf %138, %139 : vector<5x1xf32>
    %141 = vector.broadcast %140 : vector<5x1xf32> to vector<5x32xf32>
    %142 = arith.subf %132, %141 : vector<5x32xf32>
    %143 = arith.mulf %142, %142 : vector<5x32xf32>
    %cst_71 = arith.constant dense<0.000000e+00> : vector<5xf32>
    %144 = vector.multi_reduction <add>, %143, %cst_71 [1] : vector<5x32xf32> to vector<5xf32>
    %145 = vector.shape_cast %144 : vector<5xf32> to vector<5x1xf32>
    %cst_72 = arith.constant 3.200000e+01 : f32
    %146 = vector.broadcast %cst_72 : f32 to vector<5x1xf32>
    %147 = arith.divf %145, %146 : vector<5x1xf32>
    %cst_73 = arith.constant 9.99999997E-7 : f32
    %148 = vector.broadcast %cst_73 : f32 to vector<5x1xf32>
    %149 = arith.addf %147, %148 : vector<5x1xf32>
    %150 = math.rsqrt %149 : vector<5x1xf32>
    %151 = vector.broadcast %150 : vector<5x1xf32> to vector<5x32xf32>
    %152 = arith.mulf %142, %151 : vector<5x32xf32>
    %153 = vector.broadcast %134 : vector<1x32xf32> to vector<5x32xf32>
    %154 = arith.mulf %152, %153 : vector<5x32xf32>
    %155 = vector.broadcast %136 : vector<1x32xf32> to vector<5x32xf32>
    %156 = arith.addf %154, %155 : vector<5x32xf32>
    %c0_74 = arith.constant 0 : index
    %c0_75 = arith.constant 0 : index
    %c0_76 = arith.constant 0 : index
    %157 = vector.load %arg13[%c0_74, %c0_75, %c0_76] : memref<2x32x128xf32, #tpu.memory_space<vmem>>, vector<1x32x128xf32>
    %158 = vector.shape_cast %157 : vector<1x32x128xf32> to vector<32x128xf32>
    %cst_77 = arith.constant dense<0.000000e+00> : vector<5x128xf32>
    %159 = tpu.matmul %156, %158, %cst_77 {dimension_numbers = #tpu.dot_dimension_numbers<[1], [0], [0], [1], [0, 0, 1, 1], [], []>} : vector<5x32xf32>, vector<32x128xf32>, vector<5x128xf32> -> vector<5x128xf32>
    %c0_78 = arith.constant 0 : index
    %c0_79 = arith.constant 0 : index
    %c0_80 = arith.constant 0 : index
    %160 = vector.load %arg14[%c0_78, %c0_79, %c0_80] : memref<2x1x128xf32, #tpu.memory_space<vmem>>, vector<1x1x128xf32>
    %161 = vector.shape_cast %160 : vector<1x1x128xf32> to vector<1x128xf32>
    %162 = vector.broadcast %161 : vector<1x128xf32> to vector<5x128xf32>
    %163 = arith.addf %159, %162 : vector<5x128xf32>
    %cst_81 = arith.constant 5.000000e-01 : f32
    %164 = vector.broadcast %cst_81 : f32 to vector<5x128xf32>
    %165 = arith.mulf %164, %163 : vector<5x128xf32>
    %cst_82 = arith.constant 4.471500e-02 : f32
    %166 = vector.broadcast %cst_82 : f32 to vector<5x128xf32>
    %167 = arith.mulf %166, %163 : vector<5x128xf32>
    %168 = arith.mulf %167, %163 : vector<5x128xf32>
    %169 = arith.mulf %168, %163 : vector<5x128xf32>
    %170 = arith.addf %163, %169 : vector<5x128xf32>
    %cst_83 = arith.constant 0.797884583 : f32
    %171 = vector.broadcast %cst_83 : f32 to vector<5x128xf32>
    %172 = arith.mulf %171, %170 : vector<5x128xf32>
    %173 = math.tanh %172 : vector<5x128xf32>
    %cst_84 = arith.constant 1.000000e+00 : f32
    %174 = vector.broadcast %cst_84 : f32 to vector<5x128xf32>
    %175 = arith.addf %174, %173 : vector<5x128xf32>
    %176 = arith.mulf %165, %175 : vector<5x128xf32>
    %c0_85 = arith.constant 0 : index
    %c0_86 = arith.constant 0 : index
    %c0_87 = arith.constant 0 : index
    %177 = vector.load %arg15[%c0_85, %c0_86, %c0_87] : memref<2x128x32xf32, #tpu.memory_space<vmem>>, vector<1x128x32xf32>
    %178 = vector.shape_cast %177 : vector<1x128x32xf32> to vector<128x32xf32>
    %cst_88 = arith.constant dense<0.000000e+00> : vector<5x32xf32>
    %179 = tpu.matmul %176, %178, %cst_88 {dimension_numbers = #tpu.dot_dimension_numbers<[1], [0], [0], [1], [0, 0, 1, 1], [], []>} : vector<5x128xf32>, vector<128x32xf32>, vector<5x32xf32> -> vector<5x32xf32>
    %c0_89 = arith.constant 0 : index
    %c0_90 = arith.constant 0 : index
    %c0_91 = arith.constant 0 : index
    %180 = vector.load %arg16[%c0_89, %c0_90, %c0_91] : memref<2x1x32xf32, #tpu.memory_space<vmem>>, vector<1x1x32xf32>
    %181 = vector.shape_cast %180 : vector<1x1x32xf32> to vector<1x32xf32>
    %182 = vector.broadcast %181 : vector<1x32xf32> to vector<5x32xf32>
    %183 = arith.addf %179, %182 : vector<5x32xf32>
    %184 = arith.addf %132, %183 : vector<5x32xf32>
    %c1 = arith.constant 1 : index
    %c0_92 = arith.constant 0 : index
    %c0_93 = arith.constant 0 : index
    %185 = vector.load %arg5[%c1, %c0_92, %c0_93] : memref<2x1x32xf32, #tpu.memory_space<vmem>>, vector<1x1x32xf32>
    %186 = vector.shape_cast %185 : vector<1x1x32xf32> to vector<1x32xf32>
    %c1_94 = arith.constant 1 : index
    %c0_95 = arith.constant 0 : index
    %c0_96 = arith.constant 0 : index
    %187 = vector.load %arg6[%c1_94, %c0_95, %c0_96] : memref<2x1x32xf32, #tpu.memory_space<vmem>>, vector<1x1x32xf32>
    %188 = vector.shape_cast %187 : vector<1x1x32xf32> to vector<1x32xf32>
    %cst_97 = arith.constant dense<0.000000e+00> : vector<5xf32>
    %189 = vector.multi_reduction <add>, %184, %cst_97 [1] : vector<5x32xf32> to vector<5xf32>
    %190 = vector.shape_cast %189 : vector<5xf32> to vector<5x1xf32>
    %cst_98 = arith.constant 3.200000e+01 : f32
    %191 = vector.broadcast %cst_98 : f32 to vector<5x1xf32>
    %192 = arith.divf %190, %191 : vector<5x1xf32>
    %193 = vector.broadcast %192 : vector<5x1xf32> to vector<5x32xf32>
    %194 = arith.subf %184, %193 : vector<5x32xf32>
    %195 = arith.mulf %194, %194 : vector<5x32xf32>
    %cst_99 = arith.constant dense<0.000000e+00> : vector<5xf32>
    %196 = vector.multi_reduction <add>, %195, %cst_99 [1] : vector<5x32xf32> to vector<5xf32>
    %197 = vector.shape_cast %196 : vector<5xf32> to vector<5x1xf32>
    %cst_100 = arith.constant 3.200000e+01 : f32
    %198 = vector.broadcast %cst_100 : f32 to vector<5x1xf32>
    %199 = arith.divf %197, %198 : vector<5x1xf32>
    %cst_101 = arith.constant 9.99999997E-7 : f32
    %200 = vector.broadcast %cst_101 : f32 to vector<5x1xf32>
    %201 = arith.addf %199, %200 : vector<5x1xf32>
    %202 = math.rsqrt %201 : vector<5x1xf32>
    %203 = vector.broadcast %202 : vector<5x1xf32> to vector<5x32xf32>
    %204 = arith.mulf %194, %203 : vector<5x32xf32>
    %205 = vector.broadcast %186 : vector<1x32xf32> to vector<5x32xf32>
    %206 = arith.mulf %204, %205 : vector<5x32xf32>
    %207 = vector.broadcast %188 : vector<1x32xf32> to vector<5x32xf32>
    %208 = arith.addf %206, %207 : vector<5x32xf32>
    %c1_102 = arith.constant 1 : index
    %c0_103 = arith.constant 0 : index
    %c0_104 = arith.constant 0 : index
    %209 = vector.load %arg7[%c1_102, %c0_103, %c0_104] : memref<2x32x96xf32, #tpu.memory_space<vmem>>, vector<1x32x96xf32>
    %210 = vector.shape_cast %209 : vector<1x32x96xf32> to vector<32x96xf32>
    %cst_105 = arith.constant dense<0.000000e+00> : vector<5x96xf32>
    %211 = tpu.matmul %208, %210, %cst_105 {dimension_numbers = #tpu.dot_dimension_numbers<[1], [0], [0], [1], [0, 0, 1, 1], [], []>} : vector<5x32xf32>, vector<32x96xf32>, vector<5x96xf32> -> vector<5x96xf32>
    %c1_106 = arith.constant 1 : index
    %c0_107 = arith.constant 0 : index
    %c0_108 = arith.constant 0 : index
    %212 = vector.load %arg8[%c1_106, %c0_107, %c0_108] : memref<2x1x96xf32, #tpu.memory_space<vmem>>, vector<1x1x96xf32>
    %213 = vector.shape_cast %212 : vector<1x1x96xf32> to vector<1x96xf32>
    %214 = vector.broadcast %213 : vector<1x96xf32> to vector<5x96xf32>
    %215 = arith.addf %211, %214 : vector<5x96xf32>
    %216 = vector.extract_strided_slice %215 {offsets = [0, 0], sizes = [5, 8], strides = [1, 1]} : vector<5x96xf32> to vector<5x8xf32>
    %217 = vector.extract_strided_slice %215 {offsets = [0, 32], sizes = [5, 8], strides = [1, 1]} : vector<5x96xf32> to vector<5x8xf32>
    %218 = vector.extract_strided_slice %215 {offsets = [0, 64], sizes = [5, 8], strides = [1, 1]} : vector<5x96xf32> to vector<5x8xf32>
    %cst_109 = arith.constant dense<0.000000e+00> : vector<5x5xf32>
    %219 = tpu.matmul %216, %217, %cst_109 {dimension_numbers = #tpu.dot_dimension_numbers<[1], [1], [0], [0], [0, 0, 1, 0], [], []>} : vector<5x8xf32>, vector<5x8xf32>, vector<5x5xf32> -> vector<5x5xf32>
    %cst_110 = arith.constant 0.353553385 : f32
    %220 = vector.broadcast %cst_110 : f32 to vector<5x5xf32>
    %221 = arith.mulf %219, %220 : vector<5x5xf32>
    %cst_111 = arith.constant dense<0xFF800000> : vector<5xf32>
    %222 = vector.multi_reduction <maximumf>, %221, %cst_111 [1] : vector<5x5xf32> to vector<5xf32>
    %223 = vector.shape_cast %222 : vector<5xf32> to vector<5x1xf32>
    %224 = vector.broadcast %223 : vector<5x1xf32> to vector<5x5xf32>
    %225 = arith.subf %221, %224 : vector<5x5xf32>
    %226 = math.exp %225 : vector<5x5xf32>
    %cst_112 = arith.constant dense<0.000000e+00> : vector<5xf32>
    %227 = vector.multi_reduction <add>, %226, %cst_112 [1] : vector<5x5xf32> to vector<5xf32>
    %228 = vector.shape_cast %227 : vector<5xf32> to vector<5x1xf32>
    %229 = tpu.reciprocal %228 {approx = true} : vector<5x1xf32> -> vector<5x1xf32>
    %230 = vector.broadcast %229 : vector<5x1xf32> to vector<5x5xf32>
    %231 = arith.mulf %226, %230 : vector<5x5xf32>
    %cst_113 = arith.constant dense<0.000000e+00> : vector<5x8xf32>
    %232 = tpu.matmul %231, %218, %cst_113 {dimension_numbers = #tpu.dot_dimension_numbers<[1], [0], [0], [1], [0, 0, 1, 1], [], []>} : vector<5x5xf32>, vector<5x8xf32>, vector<5x8xf32> -> vector<5x8xf32>
    %c1_114 = arith.constant 1 : index
    %c0_115 = arith.constant 0 : index
    %c0_116 = arith.constant 0 : index
    %233 = vector.load %arg9[%c1_114, %c0_115, %c0_116] : memref<2x32x32xf32, #tpu.memory_space<vmem>>, vector<1x8x32xf32>
    %234 = vector.shape_cast %233 : vector<1x8x32xf32> to vector<8x32xf32>
    %cst_117 = arith.constant dense<0.000000e+00> : vector<5x32xf32>
    %235 = tpu.matmul %232, %234, %cst_117 {dimension_numbers = #tpu.dot_dimension_numbers<[1], [0], [0], [1], [0, 0, 1, 1], [], []>} : vector<5x8xf32>, vector<8x32xf32>, vector<5x32xf32> -> vector<5x32xf32>
    %236 = vector.extract_strided_slice %215 {offsets = [0, 8], sizes = [5, 8], strides = [1, 1]} : vector<5x96xf32> to vector<5x8xf32>
    %237 = vector.extract_strided_slice %215 {offsets = [0, 40], sizes = [5, 8], strides = [1, 1]} : vector<5x96xf32> to vector<5x8xf32>
    %238 = vector.extract_strided_slice %215 {offsets = [0, 72], sizes = [5, 8], strides = [1, 1]} : vector<5x96xf32> to vector<5x8xf32>
    %cst_118 = arith.constant dense<0.000000e+00> : vector<5x5xf32>
    %239 = tpu.matmul %236, %237, %cst_118 {dimension_numbers = #tpu.dot_dimension_numbers<[1], [1], [0], [0], [0, 0, 1, 0], [], []>} : vector<5x8xf32>, vector<5x8xf32>, vector<5x5xf32> -> vector<5x5xf32>
    %cst_119 = arith.constant 0.353553385 : f32
    %240 = vector.broadcast %cst_119 : f32 to vector<5x5xf32>
    %241 = arith.mulf %239, %240 : vector<5x5xf32>
    %cst_120 = arith.constant dense<0xFF800000> : vector<5xf32>
    %242 = vector.multi_reduction <maximumf>, %241, %cst_120 [1] : vector<5x5xf32> to vector<5xf32>
    %243 = vector.shape_cast %242 : vector<5xf32> to vector<5x1xf32>
    %244 = vector.broadcast %243 : vector<5x1xf32> to vector<5x5xf32>
    %245 = arith.subf %241, %244 : vector<5x5xf32>
    %246 = math.exp %245 : vector<5x5xf32>
    %cst_121 = arith.constant dense<0.000000e+00> : vector<5xf32>
    %247 = vector.multi_reduction <add>, %246, %cst_121 [1] : vector<5x5xf32> to vector<5xf32>
    %248 = vector.shape_cast %247 : vector<5xf32> to vector<5x1xf32>
    %249 = tpu.reciprocal %248 {approx = true} : vector<5x1xf32> -> vector<5x1xf32>
    %250 = vector.broadcast %249 : vector<5x1xf32> to vector<5x5xf32>
    %251 = arith.mulf %246, %250 : vector<5x5xf32>
    %cst_122 = arith.constant dense<0.000000e+00> : vector<5x8xf32>
    %252 = tpu.matmul %251, %238, %cst_122 {dimension_numbers = #tpu.dot_dimension_numbers<[1], [0], [0], [1], [0, 0, 1, 1], [], []>} : vector<5x5xf32>, vector<5x8xf32>, vector<5x8xf32> -> vector<5x8xf32>
    %c1_123 = arith.constant 1 : index
    %c8_124 = arith.constant 8 : index
    %c0_125 = arith.constant 0 : index
    %253 = vector.load %arg9[%c1_123, %c8_124, %c0_125] : memref<2x32x32xf32, #tpu.memory_space<vmem>>, vector<1x8x32xf32>
    %254 = vector.shape_cast %253 : vector<1x8x32xf32> to vector<8x32xf32>
    %cst_126 = arith.constant dense<0.000000e+00> : vector<5x32xf32>
    %255 = tpu.matmul %252, %254, %cst_126 {dimension_numbers = #tpu.dot_dimension_numbers<[1], [0], [0], [1], [0, 0, 1, 1], [], []>} : vector<5x8xf32>, vector<8x32xf32>, vector<5x32xf32> -> vector<5x32xf32>
    %256 = arith.addf %235, %255 : vector<5x32xf32>
    %257 = vector.extract_strided_slice %215 {offsets = [0, 16], sizes = [5, 8], strides = [1, 1]} : vector<5x96xf32> to vector<5x8xf32>
    %258 = vector.extract_strided_slice %215 {offsets = [0, 48], sizes = [5, 8], strides = [1, 1]} : vector<5x96xf32> to vector<5x8xf32>
    %259 = vector.extract_strided_slice %215 {offsets = [0, 80], sizes = [5, 8], strides = [1, 1]} : vector<5x96xf32> to vector<5x8xf32>
    %cst_127 = arith.constant dense<0.000000e+00> : vector<5x5xf32>
    %260 = tpu.matmul %257, %258, %cst_127 {dimension_numbers = #tpu.dot_dimension_numbers<[1], [1], [0], [0], [0, 0, 1, 0], [], []>} : vector<5x8xf32>, vector<5x8xf32>, vector<5x5xf32> -> vector<5x5xf32>
    %cst_128 = arith.constant 0.353553385 : f32
    %261 = vector.broadcast %cst_128 : f32 to vector<5x5xf32>
    %262 = arith.mulf %260, %261 : vector<5x5xf32>
    %cst_129 = arith.constant dense<0xFF800000> : vector<5xf32>
    %263 = vector.multi_reduction <maximumf>, %262, %cst_129 [1] : vector<5x5xf32> to vector<5xf32>
    %264 = vector.shape_cast %263 : vector<5xf32> to vector<5x1xf32>
    %265 = vector.broadcast %264 : vector<5x1xf32> to vector<5x5xf32>
    %266 = arith.subf %262, %265 : vector<5x5xf32>
    %267 = math.exp %266 : vector<5x5xf32>
    %cst_130 = arith.constant dense<0.000000e+00> : vector<5xf32>
    %268 = vector.multi_reduction <add>, %267, %cst_130 [1] : vector<5x5xf32> to vector<5xf32>
    %269 = vector.shape_cast %268 : vector<5xf32> to vector<5x1xf32>
    %270 = tpu.reciprocal %269 {approx = true} : vector<5x1xf32> -> vector<5x1xf32>
    %271 = vector.broadcast %270 : vector<5x1xf32> to vector<5x5xf32>
    %272 = arith.mulf %267, %271 : vector<5x5xf32>
    %cst_131 = arith.constant dense<0.000000e+00> : vector<5x8xf32>
    %273 = tpu.matmul %272, %259, %cst_131 {dimension_numbers = #tpu.dot_dimension_numbers<[1], [0], [0], [1], [0, 0, 1, 1], [], []>} : vector<5x5xf32>, vector<5x8xf32>, vector<5x8xf32> -> vector<5x8xf32>
    %c1_132 = arith.constant 1 : index
    %c16_133 = arith.constant 16 : index
    %c0_134 = arith.constant 0 : index
    %274 = vector.load %arg9[%c1_132, %c16_133, %c0_134] : memref<2x32x32xf32, #tpu.memory_space<vmem>>, vector<1x8x32xf32>
    %275 = vector.shape_cast %274 : vector<1x8x32xf32> to vector<8x32xf32>
    %cst_135 = arith.constant dense<0.000000e+00> : vector<5x32xf32>
    %276 = tpu.matmul %273, %275, %cst_135 {dimension_numbers = #tpu.dot_dimension_numbers<[1], [0], [0], [1], [0, 0, 1, 1], [], []>} : vector<5x8xf32>, vector<8x32xf32>, vector<5x32xf32> -> vector<5x32xf32>
    %277 = arith.addf %256, %276 : vector<5x32xf32>
    %278 = vector.extract_strided_slice %215 {offsets = [0, 24], sizes = [5, 8], strides = [1, 1]} : vector<5x96xf32> to vector<5x8xf32>
    %279 = vector.extract_strided_slice %215 {offsets = [0, 56], sizes = [5, 8], strides = [1, 1]} : vector<5x96xf32> to vector<5x8xf32>
    %280 = vector.extract_strided_slice %215 {offsets = [0, 88], sizes = [5, 8], strides = [1, 1]} : vector<5x96xf32> to vector<5x8xf32>
    %cst_136 = arith.constant dense<0.000000e+00> : vector<5x5xf32>
    %281 = tpu.matmul %278, %279, %cst_136 {dimension_numbers = #tpu.dot_dimension_numbers<[1], [1], [0], [0], [0, 0, 1, 0], [], []>} : vector<5x8xf32>, vector<5x8xf32>, vector<5x5xf32> -> vector<5x5xf32>
    %cst_137 = arith.constant 0.353553385 : f32
    %282 = vector.broadcast %cst_137 : f32 to vector<5x5xf32>
    %283 = arith.mulf %281, %282 : vector<5x5xf32>
    %cst_138 = arith.constant dense<0xFF800000> : vector<5xf32>
    %284 = vector.multi_reduction <maximumf>, %283, %cst_138 [1] : vector<5x5xf32> to vector<5xf32>
    %285 = vector.shape_cast %284 : vector<5xf32> to vector<5x1xf32>
    %286 = vector.broadcast %285 : vector<5x1xf32> to vector<5x5xf32>
    %287 = arith.subf %283, %286 : vector<5x5xf32>
    %288 = math.exp %287 : vector<5x5xf32>
    %cst_139 = arith.constant dense<0.000000e+00> : vector<5xf32>
    %289 = vector.multi_reduction <add>, %288, %cst_139 [1] : vector<5x5xf32> to vector<5xf32>
    %290 = vector.shape_cast %289 : vector<5xf32> to vector<5x1xf32>
    %291 = tpu.reciprocal %290 {approx = true} : vector<5x1xf32> -> vector<5x1xf32>
    %292 = vector.broadcast %291 : vector<5x1xf32> to vector<5x5xf32>
    %293 = arith.mulf %288, %292 : vector<5x5xf32>
    %cst_140 = arith.constant dense<0.000000e+00> : vector<5x8xf32>
    %294 = tpu.matmul %293, %280, %cst_140 {dimension_numbers = #tpu.dot_dimension_numbers<[1], [0], [0], [1], [0, 0, 1, 1], [], []>} : vector<5x5xf32>, vector<5x8xf32>, vector<5x8xf32> -> vector<5x8xf32>
    %c1_141 = arith.constant 1 : index
    %c24_142 = arith.constant 24 : index
    %c0_143 = arith.constant 0 : index
    %295 = vector.load %arg9[%c1_141, %c24_142, %c0_143] : memref<2x32x32xf32, #tpu.memory_space<vmem>>, vector<1x8x32xf32>
    %296 = vector.shape_cast %295 : vector<1x8x32xf32> to vector<8x32xf32>
    %cst_144 = arith.constant dense<0.000000e+00> : vector<5x32xf32>
    %297 = tpu.matmul %294, %296, %cst_144 {dimension_numbers = #tpu.dot_dimension_numbers<[1], [0], [0], [1], [0, 0, 1, 1], [], []>} : vector<5x8xf32>, vector<8x32xf32>, vector<5x32xf32> -> vector<5x32xf32>
    %298 = arith.addf %277, %297 : vector<5x32xf32>
    %c1_145 = arith.constant 1 : index
    %c0_146 = arith.constant 0 : index
    %c0_147 = arith.constant 0 : index
    %299 = vector.load %arg10[%c1_145, %c0_146, %c0_147] : memref<2x1x32xf32, #tpu.memory_space<vmem>>, vector<1x1x32xf32>
    %300 = vector.shape_cast %299 : vector<1x1x32xf32> to vector<1x32xf32>
    %301 = vector.broadcast %300 : vector<1x32xf32> to vector<5x32xf32>
    %302 = arith.addf %298, %301 : vector<5x32xf32>
    %303 = arith.addf %184, %302 : vector<5x32xf32>
    %c1_148 = arith.constant 1 : index
    %c0_149 = arith.constant 0 : index
    %c0_150 = arith.constant 0 : index
    %304 = vector.load %arg11[%c1_148, %c0_149, %c0_150] : memref<2x1x32xf32, #tpu.memory_space<vmem>>, vector<1x1x32xf32>
    %305 = vector.shape_cast %304 : vector<1x1x32xf32> to vector<1x32xf32>
    %c1_151 = arith.constant 1 : index
    %c0_152 = arith.constant 0 : index
    %c0_153 = arith.constant 0 : index
    %306 = vector.load %arg12[%c1_151, %c0_152, %c0_153] : memref<2x1x32xf32, #tpu.memory_space<vmem>>, vector<1x1x32xf32>
    %307 = vector.shape_cast %306 : vector<1x1x32xf32> to vector<1x32xf32>
    %cst_154 = arith.constant dense<0.000000e+00> : vector<5xf32>
    %308 = vector.multi_reduction <add>, %303, %cst_154 [1] : vector<5x32xf32> to vector<5xf32>
    %309 = vector.shape_cast %308 : vector<5xf32> to vector<5x1xf32>
    %cst_155 = arith.constant 3.200000e+01 : f32
    %310 = vector.broadcast %cst_155 : f32 to vector<5x1xf32>
    %311 = arith.divf %309, %310 : vector<5x1xf32>
    %312 = vector.broadcast %311 : vector<5x1xf32> to vector<5x32xf32>
    %313 = arith.subf %303, %312 : vector<5x32xf32>
    %314 = arith.mulf %313, %313 : vector<5x32xf32>
    %cst_156 = arith.constant dense<0.000000e+00> : vector<5xf32>
    %315 = vector.multi_reduction <add>, %314, %cst_156 [1] : vector<5x32xf32> to vector<5xf32>
    %316 = vector.shape_cast %315 : vector<5xf32> to vector<5x1xf32>
    %cst_157 = arith.constant 3.200000e+01 : f32
    %317 = vector.broadcast %cst_157 : f32 to vector<5x1xf32>
    %318 = arith.divf %316, %317 : vector<5x1xf32>
    %cst_158 = arith.constant 9.99999997E-7 : f32
    %319 = vector.broadcast %cst_158 : f32 to vector<5x1xf32>
    %320 = arith.addf %318, %319 : vector<5x1xf32>
    %321 = math.rsqrt %320 : vector<5x1xf32>
    %322 = vector.broadcast %321 : vector<5x1xf32> to vector<5x32xf32>
    %323 = arith.mulf %313, %322 : vector<5x32xf32>
    %324 = vector.broadcast %305 : vector<1x32xf32> to vector<5x32xf32>
    %325 = arith.mulf %323, %324 : vector<5x32xf32>
    %326 = vector.broadcast %307 : vector<1x32xf32> to vector<5x32xf32>
    %327 = arith.addf %325, %326 : vector<5x32xf32>
    %c1_159 = arith.constant 1 : index
    %c0_160 = arith.constant 0 : index
    %c0_161 = arith.constant 0 : index
    %328 = vector.load %arg13[%c1_159, %c0_160, %c0_161] : memref<2x32x128xf32, #tpu.memory_space<vmem>>, vector<1x32x128xf32>
    %329 = vector.shape_cast %328 : vector<1x32x128xf32> to vector<32x128xf32>
    %cst_162 = arith.constant dense<0.000000e+00> : vector<5x128xf32>
    %330 = tpu.matmul %327, %329, %cst_162 {dimension_numbers = #tpu.dot_dimension_numbers<[1], [0], [0], [1], [0, 0, 1, 1], [], []>} : vector<5x32xf32>, vector<32x128xf32>, vector<5x128xf32> -> vector<5x128xf32>
    %c1_163 = arith.constant 1 : index
    %c0_164 = arith.constant 0 : index
    %c0_165 = arith.constant 0 : index
    %331 = vector.load %arg14[%c1_163, %c0_164, %c0_165] : memref<2x1x128xf32, #tpu.memory_space<vmem>>, vector<1x1x128xf32>
    %332 = vector.shape_cast %331 : vector<1x1x128xf32> to vector<1x128xf32>
    %333 = vector.broadcast %332 : vector<1x128xf32> to vector<5x128xf32>
    %334 = arith.addf %330, %333 : vector<5x128xf32>
    %cst_166 = arith.constant 5.000000e-01 : f32
    %335 = vector.broadcast %cst_166 : f32 to vector<5x128xf32>
    %336 = arith.mulf %335, %334 : vector<5x128xf32>
    %cst_167 = arith.constant 4.471500e-02 : f32
    %337 = vector.broadcast %cst_167 : f32 to vector<5x128xf32>
    %338 = arith.mulf %337, %334 : vector<5x128xf32>
    %339 = arith.mulf %338, %334 : vector<5x128xf32>
    %340 = arith.mulf %339, %334 : vector<5x128xf32>
    %341 = arith.addf %334, %340 : vector<5x128xf32>
    %cst_168 = arith.constant 0.797884583 : f32
    %342 = vector.broadcast %cst_168 : f32 to vector<5x128xf32>
    %343 = arith.mulf %342, %341 : vector<5x128xf32>
    %344 = math.tanh %343 : vector<5x128xf32>
    %cst_169 = arith.constant 1.000000e+00 : f32
    %345 = vector.broadcast %cst_169 : f32 to vector<5x128xf32>
    %346 = arith.addf %345, %344 : vector<5x128xf32>
    %347 = arith.mulf %336, %346 : vector<5x128xf32>
    %c1_170 = arith.constant 1 : index
    %c0_171 = arith.constant 0 : index
    %c0_172 = arith.constant 0 : index
    %348 = vector.load %arg15[%c1_170, %c0_171, %c0_172] : memref<2x128x32xf32, #tpu.memory_space<vmem>>, vector<1x128x32xf32>
    %349 = vector.shape_cast %348 : vector<1x128x32xf32> to vector<128x32xf32>
    %cst_173 = arith.constant dense<0.000000e+00> : vector<5x32xf32>
    %350 = tpu.matmul %347, %349, %cst_173 {dimension_numbers = #tpu.dot_dimension_numbers<[1], [0], [0], [1], [0, 0, 1, 1], [], []>} : vector<5x128xf32>, vector<128x32xf32>, vector<5x32xf32> -> vector<5x32xf32>
    %c1_174 = arith.constant 1 : index
    %c0_175 = arith.constant 0 : index
    %c0_176 = arith.constant 0 : index
    %351 = vector.load %arg16[%c1_174, %c0_175, %c0_176] : memref<2x1x32xf32, #tpu.memory_space<vmem>>, vector<1x1x32xf32>
    %352 = vector.shape_cast %351 : vector<1x1x32xf32> to vector<1x32xf32>
    %353 = vector.broadcast %352 : vector<1x32xf32> to vector<5x32xf32>
    %354 = arith.addf %350, %353 : vector<5x32xf32>
    %355 = arith.addf %303, %354 : vector<5x32xf32>
    %c0_177 = arith.constant 0 : index
    %c0_178 = arith.constant 0 : index
    %356 = vector.load %arg17[%c0_177, %c0_178] : memref<1x32xf32, #tpu.memory_space<vmem>>, vector<1x32xf32>
    %c0_179 = arith.constant 0 : index
    %c0_180 = arith.constant 0 : index
    %357 = vector.load %arg18[%c0_179, %c0_180] : memref<1x32xf32, #tpu.memory_space<vmem>>, vector<1x32xf32>
    %cst_181 = arith.constant dense<0.000000e+00> : vector<5xf32>
    %358 = vector.multi_reduction <add>, %355, %cst_181 [1] : vector<5x32xf32> to vector<5xf32>
    %359 = vector.shape_cast %358 : vector<5xf32> to vector<5x1xf32>
    %cst_182 = arith.constant 3.200000e+01 : f32
    %360 = vector.broadcast %cst_182 : f32 to vector<5x1xf32>
    %361 = arith.divf %359, %360 : vector<5x1xf32>
    %362 = vector.broadcast %361 : vector<5x1xf32> to vector<5x32xf32>
    %363 = arith.subf %355, %362 : vector<5x32xf32>
    %364 = arith.mulf %363, %363 : vector<5x32xf32>
    %cst_183 = arith.constant dense<0.000000e+00> : vector<5xf32>
    %365 = vector.multi_reduction <add>, %364, %cst_183 [1] : vector<5x32xf32> to vector<5xf32>
    %366 = vector.shape_cast %365 : vector<5xf32> to vector<5x1xf32>
    %cst_184 = arith.constant 3.200000e+01 : f32
    %367 = vector.broadcast %cst_184 : f32 to vector<5x1xf32>
    %368 = arith.divf %366, %367 : vector<5x1xf32>
    %cst_185 = arith.constant 9.99999997E-7 : f32
    %369 = vector.broadcast %cst_185 : f32 to vector<5x1xf32>
    %370 = arith.addf %368, %369 : vector<5x1xf32>
    %371 = math.rsqrt %370 : vector<5x1xf32>
    %372 = vector.broadcast %371 : vector<5x1xf32> to vector<5x32xf32>
    %373 = arith.mulf %363, %372 : vector<5x32xf32>
    %374 = vector.broadcast %356 : vector<1x32xf32> to vector<5x32xf32>
    %375 = arith.mulf %373, %374 : vector<5x32xf32>
    %376 = vector.broadcast %357 : vector<1x32xf32> to vector<5x32xf32>
    %377 = arith.addf %375, %376 : vector<5x32xf32>
    %378 = vector.extract_strided_slice %377 {offsets = [0, 0], sizes = [1, 32], strides = [1, 1]} : vector<5x32xf32> to vector<1x32xf32>
    %379 = vector.extract_strided_slice %377 {offsets = [1, 0], sizes = [1, 32], strides = [1, 1]} : vector<5x32xf32> to vector<1x32xf32>
    %380 = arith.addf %378, %379 : vector<1x32xf32>
    %cst_186 = arith.constant 5.000000e-01 : f32
    %381 = vector.broadcast %cst_186 : f32 to vector<1x32xf32>
    %382 = arith.mulf %380, %381 : vector<1x32xf32>
    %c0_187 = arith.constant 0 : index
    %c0_188 = arith.constant 0 : index
    %383 = vector.load %arg19[%c0_187, %c0_188] : memref<1x32xf32, #tpu.memory_space<vmem>>, vector<1x32xf32>
    %c0_189 = arith.constant 0 : index
    %c0_190 = arith.constant 0 : index
    %384 = vector.load %arg20[%c0_189, %c0_190] : memref<1x32xf32, #tpu.memory_space<vmem>>, vector<1x32xf32>
    %cst_191 = arith.constant dense<0.000000e+00> : vector<1xf32>
    %385 = vector.multi_reduction <add>, %382, %cst_191 [1] : vector<1x32xf32> to vector<1xf32>
    %386 = vector.shape_cast %385 : vector<1xf32> to vector<1x1xf32>
    %cst_192 = arith.constant 3.200000e+01 : f32
    %387 = vector.broadcast %cst_192 : f32 to vector<1x1xf32>
    %388 = arith.divf %386, %387 : vector<1x1xf32>
    %389 = vector.broadcast %388 : vector<1x1xf32> to vector<1x32xf32>
    %390 = arith.subf %382, %389 : vector<1x32xf32>
    %391 = arith.mulf %390, %390 : vector<1x32xf32>
    %cst_193 = arith.constant dense<0.000000e+00> : vector<1xf32>
    %392 = vector.multi_reduction <add>, %391, %cst_193 [1] : vector<1x32xf32> to vector<1xf32>
    %393 = vector.shape_cast %392 : vector<1xf32> to vector<1x1xf32>
    %cst_194 = arith.constant 3.200000e+01 : f32
    %394 = vector.broadcast %cst_194 : f32 to vector<1x1xf32>
    %395 = arith.divf %393, %394 : vector<1x1xf32>
    %cst_195 = arith.constant 9.99999997E-7 : f32
    %396 = vector.broadcast %cst_195 : f32 to vector<1x1xf32>
    %397 = arith.addf %395, %396 : vector<1x1xf32>
    %398 = math.rsqrt %397 : vector<1x1xf32>
    %399 = vector.broadcast %398 : vector<1x1xf32> to vector<1x32xf32>
    %400 = arith.mulf %390, %399 : vector<1x32xf32>
    %401 = arith.mulf %400, %383 : vector<1x32xf32>
    %402 = arith.addf %401, %384 : vector<1x32xf32>
    %c0_196 = arith.constant 0 : index
    %c0_197 = arith.constant 0 : index
    %403 = vector.load %arg21[%c0_196, %c0_197] : memref<32x8xf32, #tpu.memory_space<vmem>>, vector<32x8xf32>
    %cst_198 = arith.constant dense<0.000000e+00> : vector<1x8xf32>
    %404 = tpu.matmul %402, %403, %cst_198 {dimension_numbers = #tpu.dot_dimension_numbers<[1], [0], [0], [1], [0, 0, 1, 1], [], []>} : vector<1x32xf32>, vector<32x8xf32>, vector<1x8xf32> -> vector<1x8xf32>
    %c0_199 = arith.constant 0 : index
    %c0_200 = arith.constant 0 : index
    %405 = vector.load %arg22[%c0_199, %c0_200] : memref<1x8xf32, #tpu.memory_space<vmem>>, vector<1x8xf32>
    %406 = arith.addf %404, %405 : vector<1x8xf32>
    %c0_201 = arith.constant 0 : index
    %c0_202 = arith.constant 0 : index
    %c0_203 = arith.constant 0 : index
    %407 = vector.load %arg23[%c0_201, %c0_202, %c0_203] : memref<1x1x8xf32, #tpu.memory_space<vmem>>, vector<1x1x8xf32>
    %408 = vector.shape_cast %407 : vector<1x1x8xf32> to vector<1x8xf32>
    %409 = vector.shape_cast %406 : vector<1x8xf32> to vector<1x1x8xf32>
    tpu.vector_store %arg23[%c0_201, %c0_202, %c0_203], %409 {strides = array<i32>} : memref<1x1x8xf32, #tpu.memory_space<vmem>>, vector<1x1x8xf32>,
    return
  }
  func.func @transform_0(%arg0: i32) -> (i32, i32, i32) {
    %c0_i32 = arith.constant 0 : i32
    %c0_i32_0 = arith.constant 0 : i32
    %c0_i32_1 = arith.constant 0 : i32
    return %arg0, %c0_i32, %c0_i32_0 : i32, i32, i32
  }
  func.func @transform_1(%arg0: i32) -> (i32, i32) {
    %c0_i32 = arith.constant 0 : i32
    %c0_i32_0 = arith.constant 0 : i32
    %c0_i32_1 = arith.constant 0 : i32
    return %c0_i32, %c0_i32_0 : i32, i32
  }
  func.func @transform_2(%arg0: i32) -> (i32, i32) {
    %c0_i32 = arith.constant 0 : i32
    %c0_i32_0 = arith.constant 0 : i32
    %c0_i32_1 = arith.constant 0 : i32
    return %c0_i32, %c0_i32_0 : i32, i32
  }
  func.func @transform_3(%arg0: i32) -> (i32, i32) {
    %c0_i32 = arith.constant 0 : i32
    %c0_i32_0 = arith.constant 0 : i32
    %c0_i32_1 = arith.constant 0 : i32
    return %c0_i32, %c0_i32_0 : i32, i32
  }
  func.func @transform_4(%arg0: i32) -> (i32, i32, i32) {
    %c0_i32 = arith.constant 0 : i32
    %c0_i32_0 = arith.constant 0 : i32
    %c0_i32_1 = arith.constant 0 : i32
    %c0_i32_2 = arith.constant 0 : i32
    return %c0_i32, %c0_i32_0, %c0_i32_1 : i32, i32, i32
  }
  func.func @transform_5(%arg0: i32) -> (i32, i32, i32) {
    %c0_i32 = arith.constant 0 : i32
    %c0_i32_0 = arith.constant 0 : i32
    %c0_i32_1 = arith.constant 0 : i32
    %c0_i32_2 = arith.constant 0 : i32
    return %c0_i32, %c0_i32_0, %c0_i32_1 : i32, i32, i32
  }
  func.func @transform_6(%arg0: i32) -> (i32, i32, i32) {
    %c0_i32 = arith.constant 0 : i32
    %c0_i32_0 = arith.constant 0 : i32
    %c0_i32_1 = arith.constant 0 : i32
    %c0_i32_2 = arith.constant 0 : i32
    return %c0_i32, %c0_i32_0, %c0_i32_1 : i32, i32, i32
  }
  func.func @transform_7(%arg0: i32) -> (i32, i32, i32) {
    %c0_i32 = arith.constant 0 : i32
    %c0_i32_0 = arith.constant 0 : i32
    %c0_i32_1 = arith.constant 0 : i32
    %c0_i32_2 = arith.constant 0 : i32
    return %c0_i32, %c0_i32_0, %c0_i32_1 : i32, i32, i32
  }
  func.func @transform_8(%arg0: i32) -> (i32, i32, i32) {
    %c0_i32 = arith.constant 0 : i32
    %c0_i32_0 = arith.constant 0 : i32
    %c0_i32_1 = arith.constant 0 : i32
    %c0_i32_2 = arith.constant 0 : i32
    return %c0_i32, %c0_i32_0, %c0_i32_1 : i32, i32, i32
  }
  func.func @transform_9(%arg0: i32) -> (i32, i32, i32) {
    %c0_i32 = arith.constant 0 : i32
    %c0_i32_0 = arith.constant 0 : i32
    %c0_i32_1 = arith.constant 0 : i32
    %c0_i32_2 = arith.constant 0 : i32
    return %c0_i32, %c0_i32_0, %c0_i32_1 : i32, i32, i32
  }
  func.func @transform_10(%arg0: i32) -> (i32, i32, i32) {
    %c0_i32 = arith.constant 0 : i32
    %c0_i32_0 = arith.constant 0 : i32
    %c0_i32_1 = arith.constant 0 : i32
    %c0_i32_2 = arith.constant 0 : i32
    return %c0_i32, %c0_i32_0, %c0_i32_1 : i32, i32, i32
  }
  func.func @transform_11(%arg0: i32) -> (i32, i32, i32) {
    %c0_i32 = arith.constant 0 : i32
    %c0_i32_0 = arith.constant 0 : i32
    %c0_i32_1 = arith.constant 0 : i32
    %c0_i32_2 = arith.constant 0 : i32
    return %c0_i32, %c0_i32_0, %c0_i32_1 : i32, i32, i32
  }
  func.func @transform_12(%arg0: i32) -> (i32, i32, i32) {
    %c0_i32 = arith.constant 0 : i32
    %c0_i32_0 = arith.constant 0 : i32
    %c0_i32_1 = arith.constant 0 : i32
    %c0_i32_2 = arith.constant 0 : i32
    return %c0_i32, %c0_i32_0, %c0_i32_1 : i32, i32, i32
  }
  func.func @transform_13(%arg0: i32) -> (i32, i32, i32) {
    %c0_i32 = arith.constant 0 : i32
    %c0_i32_0 = arith.constant 0 : i32
    %c0_i32_1 = arith.constant 0 : i32
    %c0_i32_2 = arith.constant 0 : i32
    return %c0_i32, %c0_i32_0, %c0_i32_1 : i32, i32, i32
  }
  func.func @transform_14(%arg0: i32) -> (i32, i32, i32) {
    %c0_i32 = arith.constant 0 : i32
    %c0_i32_0 = arith.constant 0 : i32
    %c0_i32_1 = arith.constant 0 : i32
    %c0_i32_2 = arith.constant 0 : i32
    return %c0_i32, %c0_i32_0, %c0_i32_1 : i32, i32, i32
  }
  func.func @transform_15(%arg0: i32) -> (i32, i32, i32) {
    %c0_i32 = arith.constant 0 : i32
    %c0_i32_0 = arith.constant 0 : i32
    %c0_i32_1 = arith.constant 0 : i32
    %c0_i32_2 = arith.constant 0 : i32
    return %c0_i32, %c0_i32_0, %c0_i32_1 : i32, i32, i32
  }
  func.func @transform_16(%arg0: i32) -> (i32, i32) {
    %c0_i32 = arith.constant 0 : i32
    %c0_i32_0 = arith.constant 0 : i32
    %c0_i32_1 = arith.constant 0 : i32
    return %c0_i32, %c0_i32_0 : i32, i32
  }
  func.func @transform_17(%arg0: i32) -> (i32, i32) {
    %c0_i32 = arith.constant 0 : i32
    %c0_i32_0 = arith.constant 0 : i32
    %c0_i32_1 = arith.constant 0 : i32
    return %c0_i32, %c0_i32_0 : i32, i32
  }
  func.func @transform_18(%arg0: i32) -> (i32, i32) {
    %c0_i32 = arith.constant 0 : i32
    %c0_i32_0 = arith.constant 0 : i32
    %c0_i32_1 = arith.constant 0 : i32
    return %c0_i32, %c0_i32_0 : i32, i32
  }
  func.func @transform_19(%arg0: i32) -> (i32, i32) {
    %c0_i32 = arith.constant 0 : i32
    %c0_i32_0 = arith.constant 0 : i32
    %c0_i32_1 = arith.constant 0 : i32
    return %c0_i32, %c0_i32_0 : i32, i32
  }
  func.func @transform_20(%arg0: i32) -> (i32, i32) {
    %c0_i32 = arith.constant 0 : i32
    %c0_i32_0 = arith.constant 0 : i32
    %c0_i32_1 = arith.constant 0 : i32
    return %c0_i32, %c0_i32_0 : i32, i32
  }
  func.func @transform_21(%arg0: i32) -> (i32, i32) {
    %c0_i32 = arith.constant 0 : i32
    %c0_i32_0 = arith.constant 0 : i32
    %c0_i32_1 = arith.constant 0 : i32
    return %c0_i32, %c0_i32_0 : i32, i32
  }
  func.func @transform_22(%arg0: i32) -> (i32, i32, i32) {
    %c0_i32 = arith.constant 0 : i32
    %c0_i32_0 = arith.constant 0 : i32
    %c0_i32_1 = arith.constant 0 : i32
    return %arg0, %c0_i32, %c0_i32_0 : i32, i32, i32
  }
}

</mosaic_0001>

<bundles_post_ra>
// kernel: ast_forward.1
= control target key start
LH: loop header
LB: loop body
LE: loop exit
PB: predicated region body
PF: predicated region fallthrough
CT: control target
= control target key end

     0   :  { %s5135_s0 = inlined_call_operand.vmem [shape: f32[2,5,256], index: 0, kind: input, shape index: {}]   ;;  %s5136_s1 = inlined_call_operand.vmem [shape: f32[256,32], index: 1, kind: input, shape index: {}]   ;;  %s5137_s2 = inlined_call_operand.vmem [shape: f32[1,32], index: 2, kind: input, shape index: {}]   ;;  %s5138_s3 = inlined_call_operand.vmem [shape: f32[5,32], index: 3, kind: input, shape index: {}]   ;;  %s5139_s4 = inlined_call_operand.vmem [shape: f32[2,1,32], index: 4, kind: input, shape index: {}]   ;;  %s5140_s5 = inlined_call_operand.vmem [shape: f32[2,1,32], index: 5, kind: input, shape index: {}]   ;;  %s5141_s6 = inlined_call_operand.vmem [shape: f32[2,32,96], index: 6, kind: input, shape index: {}]   ;;  %s5142_s7 = inlined_call_operand.vmem [shape: f32[2,1,96], index: 7, kind: input, shape index: {}]   ;;  %s5143_s8 = inlined_call_operand.vmem [shape: f32[2,32,32], index: 8, kind: input, shape index: {}]   ;;  %s5144_s9 = inlined_call_operand.vmem [shape: f32[2,1,32], index: 9, kind: input, shape index: {}]   ;;  %s5145_s10 = inlined_call_operand.vmem [shape: f32[2,1,32], index: 10, kind: input, shape index: {}]   ;;  %s5146_s11 = inlined_call_operand.vmem [shape: f32[2,1,32], index: 11, kind: input, shape index: {}]   ;;  %s5147_s12 = inlined_call_operand.vmem [shape: f32[2,32,128], index: 12, kind: input, shape index: {}]   ;;  %s5148_s13 = inlined_call_operand.vmem [shape: f32[2,1,128], index: 13, kind: input, shape index: {}]   ;;  %s5149_s14 = inlined_call_operand.vmem [shape: f32[2,128,32], index: 14, kind: input, shape index: {}]   ;;  %s5150_s15 = inlined_call_operand.vmem [shape: f32[2,1,32], index: 15, kind: input, shape index: {}]   ;;  %s5151_s16 = inlined_call_operand.vmem [shape: f32[1,32], index: 16, kind: input, shape index: {}]   ;;  %s5152_s17 = inlined_call_operand.vmem [shape: f32[1,32], index: 17, kind: input, shape index: {}]   ;;  %s5153_s18 = inlined_call_operand.vmem [shape: f32[1,32], index: 18, kind: input, shape index: {}]   ;;  %s5154_s19 = inlined_call_operand.vmem [shape: f32[1,32], index: 19, kind: input, shape index: {}]   ;;  %s5155_s20 = inlined_call_operand.vmem [shape: f32[32,8], index: 20, kind: input, shape index: {}]   ;;  %s5156_s21 = inlined_call_operand.vmem [shape: f32[1,8], index: 21, kind: input, shape index: {}]   ;;  %s5157_s22 = inlined_call_operand.hbm [shape: f32[2,1,8], index: 22, kind: output, shape index: {}]  }
   0x1   :  { %5182 = sst [smem:[#allocation11_spill]] %s5135_s0 }
   0x2   :  { %5183 = sst [smem:[#allocation12_spill]] %s5136_s1 }
   0x3   :  { %5184 = sst [smem:[#allocation13_spill]] %s5137_s2 }
   0x4   :  { %5185 = sst [smem:[#allocation14_spill]] %s5138_s3 }
   0x5   :  { %5186 = sst [smem:[#allocation15_spill]] %s5139_s4 }
   0x6   :  { %5187 = sst [smem:[#allocation16_spill]] %s5140_s5 }
   0x7   :  { %5188 = sst [smem:[#allocation17_spill]] %s5141_s6 }
   0x8   :  { %5189 = sst [smem:[#allocation18_spill]] %s5142_s7 }
   0x9   :  { %5190 = sst [smem:[#allocation19_spill]] %s5157_s22 }
   0xa   :  { %27 = vsyncpa [#allocation3], 0 }
   0xb   :  { %29 = vsyncpa [#allocation3 + $0x1], 0  ;;  %s4411_s3 = smov 0   ;;  %s4413_s28 = smov 0  }
   0xc   :  { %s4415_s29 = smov 0   ;;  %s4417_s30 = smov 0  }
   0xd LB: > { %5191 = sst [smem:[#allocation5_spill]] %s4268_s3  ;;  %s4432_s4 = sadd.s32 4294967295, %s4280_s30   ;;  %s4280_s30 = sphi %s4417_s30, %s5223_s30   ;;  %s4276_s29 = sphi %s4415_s29, %s5225_s29   ;;  %s4272_s28 = sphi %s4413_s28, %s5227_s28   ;;  %s4268_s3 = sphi %s4411_s3, %s5226_s3  }
   0xe   : > { %5192 = sst [smem:[#allocation6_spill]] %s4276_s29  ;;  %s3623_s0 = sadd.s32 4294967294, %s4280_s30  }
   0xf   : > { %5193 = sst [smem:[#allocation7_spill]] %s4280_s30  ;;  %s4436_s23 = sadd.s32 1, %s4280_s30  }
  0x10   : > { %5194 = sst [smem:[#allocation8_spill]] %s4436_s23  ;;  %s509_s1 = sadd.s32 1, %s4276_s29 }
  0x11   : > { %s506_s5 = ssub.s32 %s4280_s30, %s4436_s23  ;;  %p519_p0 = scmp.ne.s32.totalorder %s4276_s29, %s4272_s28 }
  0x12   : > { %p507_p1 = scmp.eq.s32.totalorder %s506_s5, 0  ;;  %p520_p2 = scmp.eq.s32.totalorder %s4432_s4, 1 }
  0x13   : > { %p525_p3 = scmp.ne.s32.totalorder %s4272_s28, %s4268_s3  ;;  %p526_p4 = scmp.eq.s32.totalorder %s3623_s0, 1 }
  0x14   : > { %s4447_s24 = scalar_select %p507_p1, %s4276_s29, %s509_s1  }
  0x15   : > { %p4449_p5 = por %p520_p2, %p519_p0  ;;  %p4453_p6 = por %p526_p4, %p525_p3 }
  0x16   : > { %5195 = sst [smem:[#allocation9_spill]] %s4447_s24  ;;  %p3626_p7 = scmp.ge.s32.totalorder %s4280_s30, 1 }
  0x17   : > { %s5197_s25 = scalar_select %p4453_p6, 1, 0 }
  0x18   : > { %p615_p8 = scmp.lt.s32.totalorder %s4280_s30, 3 }
  0x19   : > { %5198 = sst [smem:[#allocation10_spill]] %s5197_s25 }
  0x1a   : > { %p616_p9 = pnand %p3626_p7, %p615_p8 }
  0x1b   : > { %s5199_s27 = sld [smem:[#allocation12_spill]] (!%p616_p9)  ;;  %p676_p10 = scmp.lt.s32.totalorder (!%p616_p9), %s4432_s4, 1 }
  0x1c   : > { %619 = sbr.rel (%p616_p9) target bundleno = 8543 (0x215f), region = 108  ;;  %s5200_s24 = sld [smem:[#allocation11_spill]] (!%p616_p9) }
  0x1d   : > { %s5201_s23 = sld [smem:[#allocation13_spill]] (!%p616_p9)  ;;  %s4284_s29 = smov (!%p616_p9), 64  }
  0x1e   : > { %s5202_s30 = sld [smem:[#allocation14_spill]] (!%p616_p9)  ;;  %s5171_s25 = smov (!%p616_p9), 80  }
  0x1f   : > { %s5206_s0 = sld [smem:[#allocation16_spill]] (!%p616_p9)  ;;  %s5176_s26 = smov (!%p616_p9), 88  }
  0x20   : > { %s5207_s7 = sld [smem:[#allocation18_spill]] (!%p616_p9)  ;;  %s5172_s22 = smov (!%p616_p9), 112  }
  0x21   : > { %v714_v0 = vld [vmem:[%s5199_s27 + $0xf8] sm:$0xff]  ;;  %v713_v2 = vld [vmem:[%s5199_s27 + $0xf0] sm:$0xff]  ;;  %v712_v4 = vld [vmem:[%s5199_s27 + $0xe8] sm:$0xff]  ;;  %s677_s2 = scalar_select %p676_p10, %s4432_s4, 1  ;;  %v792_v34 = vlaneseq  ;;  %vm800_vm1 = vcmask 258048   ;;  %v4282_v50 = vmov 0.0  }
  0x22   : > { %v698_v1 = vld [vmem:[%s5199_s27 + $0x78] sm:$0xff]  ;;  %3733 = vmatprep.subr.mxu0 %v714_v0  ;;  %v697_v3 = vld [vmem:[%s5199_s27 + $0x70] sm:$0xff]  ;;  %v696_v5 = vld [vmem:[%s5199_s27 + $0x68] sm:$0xff]  ;;  %3886 = vmatprep.subr.mxu1 %v4282_v50  ;;  %vm4283_vm2 = vmmov 0   ;;  %vm840_vm3 = vcmask 261120   ;;  %vm917_vm4 = vcmask 64512  }
  0x23   : > { %3734 = vmatpush3.msra.mxu0 %v698_v1  ;;  %v711_v6 = vld [vmem:[%s5199_s27 + $0xe0] sm:$0xff]  ;;  %s3732_s5 = sshll.u32 %s677_s2, 4  ;;  %v710_v8 = vld [vmem:[%s5199_s27 + $0xd8] sm:$0xff]  ;;  %v709_v10 = vld [vmem:[%s5199_s27 + $0xd0] sm:$0xff]  ;;  %v793_v36 = vshrl.u32 %v792_v34, 7  ;;  %3888 = vmatprep.mubr.msk.f32.mxu1 %vm4283_vm2, %v4282_v50  ;;  %vm1011_vm5 = vcmask 1044480  }
  0x24   : > { %3735 = vmatprep.subr.mxu0 %v713_v2  ;;  %v695_v7 = vld [vmem:[%s5199_s27 + $0x60] sm:$0xff]  ;;  %v694_v9 = vld [vmem:[%s5199_s27 + $0x58] sm:$0xff]  ;;  %s4494_s1 = scalar_lea.vmem %s5200_s24, %s3732_s5  ;;  %v693_v11 = vld [vmem:[%s5199_s27 + $0x50] sm:$0xff]  ;;  %s5203_s5 = sld [smem:[#allocation17_spill]]  ;;  %vm993_vm6 = vcmask 36864   ;;  %vm1007_vm7 = vcmask 39936  }
  0x25   : > { %3736 = vmatpush3.msra.mxu0 %v697_v3  ;;  %v708_v12 = vld [vmem:[%s5199_s27 + $0xc8] sm:$0xff]  ;;  %v707_v15 = vld [vmem:[%s5199_s27 + $0xc0] sm:$0xff]  ;;  %v706_v17 = vld [vmem:[%s5199_s27 + $0xb8] sm:$0xff]  ;;  %vm794_vm0 = vcmp.lt.s32.totalorder %v793_v36, 4  ;;  %s5173_s3 = smov 56   ;;  %s5170_s24 = smov 48  }
  0x26   : > { %3737 = vmatprep.subr.mxu0 %v712_v4  ;;  %v682_v13 = vld [vmem:[%s4494_s1 + $0x8] sm:$0x1f]  ;;  %v691_v16 = vld [vmem:[%s5199_s27 + $0x40] sm:$0xff]  ;;  %v690_v18 = vld [vmem:[%s5199_s27 + $0x38] sm:$0xff]  ;;  %s5169_s2 = smov 104   ;;  %vm3459_vm8 = vcmask 253952  }
  0x27   : > { %3738 = vmatpush3.msra.mxu0 %v696_v5  ;;  %v692_v14 = vld [vmem:[%s5199_s27 + $0x48] sm:$0xff]  ;;  %786 = vmatprep.mubr.f32.mxu0 %v682_v13  ;;  %v705_v19 = vld [vmem:[%s5199_s27 + $0xb0] sm:$0xff]  ;;  %v703_v23 = vld [vmem:[%s5199_s27 + $0xa0] sm:$0xff]  ;;  %vm3553_vm9 = vcmask 57344  }
  0x28   : > { %3739 = vmatprep.subr.mxu0 %v711_v6  ;;  %v689_v20 = vld [vmem:[%s5199_s27 + $0x30] sm:$0xff]  ;;  %v704_v21 = vld [vmem:[%s5199_s27 + $0xa8] sm:$0xff]  ;;  %v687_v24 = vld [vmem:[%s5199_s27 + $0x20] sm:$0xff] }
  0x29   : > { %3740 = vmatpush3.msra.mxu0 %v695_v7  ;;  %v688_v22 = vld [vmem:[%s5199_s27 + $0x28] sm:$0xff]  ;;  %v702_v25 = vld [vmem:[%s5199_s27 + $0x98] sm:$0xff]  ;;  %v701_v27 = vld [vmem:[%s5199_s27 + $0x90] sm:$0xff] }
  0x2a   : > { %3741 = vmatprep.subr.mxu0 %v710_v8  ;;  %v686_v26 = vld [vmem:[%s5199_s27 + $0x18] sm:$0xff]  ;;  %v685_v28 = vld [vmem:[%s5199_s27 + $0x10] sm:$0xff]  ;;  %v700_v29 = vld [vmem:[%s5199_s27 + $0x88] sm:$0xff] }
  0x2b   : > { %3742 = vmatpush3.msra.mxu0 %v694_v9  ;;  %v684_v30 = vld [vmem:[%s5199_s27 + $0x8] sm:$0xff]  ;;  %v699_v31 = vld [vmem:[%s5199_s27 + $0x80] sm:$0xff]  ;;  %v832_v51 = vld [vmem:[%s5203_s5 + $0x18] sm:$0xff] }
  0x2c   : > { %3743 = vmatprep.subr.mxu0 %v709_v10  ;;  %v683_v32 = vld [vmem:[%s5199_s27] sm:$0xff]  ;;  %v831_v52 = vld [vmem:[%s5203_s5 + $0x10] sm:$0xff]  ;;  %v830_v53 = vld [vmem:[%s5203_s5 + $0x8] sm:$0xff] }
  0x2d   : > { %3744 = vmatpush3.msra.mxu0 %v693_v11  ;;  %v681_v33 = vld [vmem:[%s4494_s1] sm:$0x1f] }
  0x2e   : > { %3745 = vmatprep.subr.mxu0 %v708_v12  ;;  %v3629_v37 = vld [vmem:[%s5201_s23] ss:$0 sm:$0xff]  ;;  %s5178_s23 = smov 96  }
  0x2f   : > { %3746 = vmatpush3.msra.mxu0 %v692_v14  ;;  %v796_v41 = vld [vmem:[%s5202_s30] sm:$0x1f]  ;;  %s5204_s30 = sld [smem:[#allocation15_spill]] }
  0x30   : > { %3747 = vmatprep.subr.mxu0 %v707_v15  ;;  %v829_v54 = vld [vmem:[%s5203_s5] sm:$0xff] }
  0x31   : > { %3748 = vmatpush3.msra.mxu0 %v691_v16  ;;  %v3631_v61 = vld [vmem:[%s5206_s0] ss:$0 sm:$0xff] }
  0x32   : > { %3749 = vmatprep.subr.mxu0 %v706_v17  ;;  %v3632_v0 = vld [vmem:[%s5207_s7] ss:$0 sm:$0xff] }
  0x33   : > { %3750 = vmatpush3.msra.mxu0 %v690_v18 }
  0x34   : > { %3751 = vmatprep.subr.mxu0 %v705_v19 }
  0x35   : > { %3752 = vmatpush3.msra.mxu0 %v689_v20  ;;  %s5205_s1 = smov %s5204_s30  ;;  %v3630_v59 = vld [vmem:[%s5204_s30] ss:$0 sm:$0xff]  ;;  %s5177_s30 = smov 120  }
  0x36   : > { %3753 = vmatprep.subr.mxu0 %v704_v21 }
  0x37   : > { %3754 = vmatpush3.msra.mxu0 %v688_v22 }
  0x38   : > { %3755 = vmatprep.subr.mxu0 %v703_v23 }
  0x39   : > { %3756 = vmatpush3.msra.mxu0 %v687_v24 }
  0x3a   : > { %3757 = vmatprep.subr.mxu0 %v702_v25 }
  0x3b   : > { %3758 = vmatpush3.msra.mxu0 %v686_v26 }
  0x3c   : > { %3759 = vmatprep.subr.mxu0 %v701_v27 }
  0x3d   : > { %3760 = vmatpush3.msra.mxu0 %v685_v28 }
  0x3e   : > { %3761 = vmatprep.subr.mxu0 %v700_v29 }
  0x3f   : > { %3762 = vmatpush3.msra.mxu0 %v684_v30 }
  0x40   : > { %3763 = vmatprep.subr.mxu0 %v699_v31 }
  0x41   : > { %3764 = vmatpush3.msra.mxu0 %v683_v32 }
  0x42   : > { %787 = vmatmul.mubr.f32.vlgmr.msra.gmra.mxu0 %v681_v33  ;;  %3875 = vmatprep.subr.mxu0 %v4282_v50 }
  0x43   : > { %3876 = vmatpush3.msra.mxu0 %v832_v51  ;;  %3883 = vmatprep.mubr.msk.f32.mxu0 %vm4283_vm2, %v4282_v50 }
  0x44   : > { %3877 = vmatprep.subr.mxu0 %v4282_v50 }
  0x45   : > { %3878 = vmatpush3.msra.mxu0 %v831_v52 }
  0x46   : > { %3879 = vmatprep.subr.mxu0 %v4282_v50 }
  0x47   : > { %3880 = vmatpush3.msra.mxu0 %v830_v53 }
  0x48   : > { %3881 = vmatprep.subr.mxu0 %v4282_v50 }
  0x49   : > { %3882 = vmatpush3.msra.mxu0 %v829_v54 }
  0x4a   : > { %3916 = vmatprep.subr.mxu0 %v4282_v50 }
 0x102   : > { %v3765_v35 = vpop.f32.mrf.mxu0 }
 0x104   : > { %v3766_v38 = vpop.f32.mrf.mxu0 }
 0x105   : > { %v3767_v39 = vadd.f32 %v3766_v38, %v3765_v35 }
 0x107   : > { %v789_v40 = vadd.f32 %v3767_v39, %v3629_v37 }
 0x109   : > { %v795_v42 = vsel %vm794_vm0, %v789_v40, 0.0 }
 0x10a   : > { %v4570_v43 = vadd.f32 %v796_v41, %v795_v42 }
 0x10c   : > { %v801_v44 = vsel %vm800_vm1, %v4570_v43, 0.0 }
 0x10d   : > { %802 = vadd.xlane.f32.xlu0 %v801_v44 }
 0x196   : > { %v803_v45 = vpop.xlane.xlu0 %802 }
 0x197   : > { %v805_v46 = vmul.f32 0.03125, %v803_v45 }
 0x199   : > { %v806_v47 = vsub.f32 %v4570_v43, %v805_v46 }
 0x19b   : > { %v807_v48 = vmul.f32 %v806_v47, %v806_v47 }
 0x19d   : > { %v808_v49 = vsel %vm800_vm1, %v807_v48, 0.0 }
 0x19e   : > { %809 = vadd.xlane.f32.xlu0 %v808_v49  ;;  %v1084_v49 = vld [vmem:[%s5143_s8] sm:$0xff] }
 0x227   : > { %v810_v55 = vpop.xlane.xlu0 %809 }
 0x228   : > { %v811_v56 = vmul.f32 0.03125, %v810_v55 }
 0x22a   : > { %v812_v57 = vadd.f32 1e-06, %v811_v56 }
 0x22c   : > { %4172 = vrsqrt.f32 %v812_v57 }
 0x239   : > { %v4173_v58 = vpop.eup %4172 }
 0x23a   : > { %v814_v60 = vmul.f32 %v4173_v58, %v806_v47  ;;  %v1252_v47 = vld [vmem:[%s5143_s8 + $0x8] sm:$0xff]  ;;  %v1566_v58 = vld [vmem:[%s5143_s8 + $0x10] sm:$0xff] }
 0x23c   : > { %v821_v62 = vmul.f32 %v3630_v59, %v814_v60 }
 0x23e   : > { %v828_v63 = vadd.f32 %v3631_v61, %v821_v62 }
 0x240   : > { %3884 = vmatmul.mubr.msk.f32.vlgmr.msra.gmra.mxu0 %vm840_vm3, %v828_v63 }
 0x241   : > { %3918 = vmatprep.mubr.msk.f32.mxu0 %vm4283_vm2, %v4282_v50 }
 0x300   : > { %v910_v1 = vpop.f32.mrf.mxu0 }
 0x301   : > { %v4610_v2 = vadd.f32 %v3632_v0, %v910_v1 }
 0x302   : > { %v3885_v3 = vpop.f32.mrf.mxu0 }
 0x303   : > { %1005 = vrot.lane.b32.xlu0 %v4610_v2, %s4284_s29  ;;  %915 = vrot.lane.b32.xlu1 %v4610_v2, %s5178_s23  ;;  %s5213_s23 = smov 80  }
 0x375   : > { %v916_v4 = vpop.permute.xlu1 %915  ;;  %v1006_v5 = vpop.permute.xlu0 %1005 }
 0x376   : > { %3887 = vmatpush3.xpose.msk.msra.mxu1 %vm917_vm4, %v916_v4 }
 0x377   : > { %3891 = vmatprep.subr.mxu1 %v4282_v50 }
 0x379   : > { %3889 = vmatmul.mubr.msk.f32.vlgmr.msra.gmra.mxu1 %vm917_vm4, %v4610_v2 }
 0x37a   : > { %3892 = vmatpush3.msk.msra.mxu1 %vm1011_vm5, %v1006_v5  ;;  %3893 = vmatprep.mubr.msk.f32.mxu1 %vm4283_vm2, %v4282_v50 }
 0x37b   : > { %3896 = vmatprep.subr.mxu1 %v4282_v50 }
 0x439   : > { %v988_v6 = vpop.f32.mrf.mxu1 }
 0x43a   : > { %v992_v7 = vmul.f32 0.35355338, %v988_v6 }
 0x43b   : > { %v3890_v8 = vpop.f32.mrf.mxu1 }
 0x43c   : > { %v994_v9 = vsel %vm993_vm6, %v992_v7, -inf }
 0x43d   : > { %995 = vmax.xlane.f32.xlu1 %v994_v9 }
 0x44e   : > { %1401 = vrot.lane.b32.xlu1 %v4610_v2, %s5171_s25  ;;  %s5175_s25 = smov 72  }
 0x4c6   : > { %v996_v10 = vpop.xlane.xlu1 %995 }
 0x4c7   : > { %v997_v11 = vsub.f32 %v992_v7, %v996_v10 }
 0x4c9   : > { %v998_v12 = vmul.f32 1.442695, %v997_v11 }
 0x4ca   : > { %v1402_v13 = vpop.permute.xlu1 %1401 }
 0x4cb   : > { %4174 = vpow2.f32 %v998_v12  ;;  %3917 = vmatpush3.xpose.msk.msra.mxu0 %vm917_vm4, %v1402_v13  ;;  %v1808_v13 = vld [vmem:[%s5143_s8 + $0x18] sm:$0xff] }
 0x4cc   : > { %3926 = vmatprep.subr.mxu0 %v4282_v50 }
 0x4d8   : > { %v4175_v14 = vpop.eup %4174 }
 0x4d9   : > { %v1000_v15 = vsel %vm993_vm6, %v4175_v14, 0.0 }
 0x4da   : > { %1001 = vadd.xlane.f32.xlu0 %v1000_v15 }
 0x4f0   : > { %1087 = vrot.lane.b32.xlu0 %v4610_v2, %s5176_s26 }
 0x4f4   : > { %1085 = vrot.lane.b32.xlu0 %v4610_v2, %s5177_s30 }
 0x4f8   : > { %1399 = vrot.lane.b32.xlu0 %v4610_v2, %s5172_s22  ;;  %s5212_s22 = smov 112  }
 0x563   : > { %v1002_v16 = vpop.xlane.xlu0 %1001 }
 0x564   : > { %4176 = vrcp.f32 %v1002_v16 }
 0x567   : > { %v1088_v17 = vpop.permute.xlu0 %1087 }
 0x56b   : > { %v1086_v18 = vpop.permute.xlu0 %1085 }
 0x56f   : > { %v1400_v19 = vpop.permute.xlu0 %1399 }
 0x570   : > { %3919 = vmatmul.mubr.msk.f32.vlgmr.msra.gmra.mxu0 %vm917_vm4, %v1400_v19 }
 0x571   : > { %v4177_v20 = vpop.eup %4176  ;;  %3928 = vmatprep.mubr.msk.f32.mxu0 %vm4283_vm2, %v4282_v50  ;;  %3927 = vmatpush3.msra.mxu0 %v1566_v58  ;;  %v2018_v58 = vld [vmem:[%s5149_s14 + $0x20] sm:$0xff] }
 0x572   : > { %v1004_v21 = vmul.f32 %v4177_v20, %v4175_v14  ;;  %3936 = vmatprep.subr.mxu0 %v4282_v50 }
 0x574   : > { %3894 = vmatmul.mubr.msk.f32.vlgmr.msra.gmra.mxu1 %vm1007_vm7, %v1004_v21 }
 0x575   : > { %3897 = vmatpush3.xpose.msk.msra.mxu1 %vm917_vm4, %v1088_v17  ;;  %3898 = vmatprep.mubr.msk.f32.mxu1 %vm4283_vm2, %v4282_v50 }
 0x576   : > { %3901 = vmatprep.subr.mxu1 %v4282_v50 }
 0x578   : > { %3899 = vmatmul.mubr.msk.f32.vlgmr.msra.gmra.mxu1 %vm917_vm4, %v1086_v18 }
 0x579   : > { %3903 = vmatprep.mubr.msk.f32.mxu1 %vm4283_vm2, %v4282_v50 }
 0x630   : > { %v1473_v22 = vpop.f32.mrf.mxu0 }
 0x631   : > { %v1477_v35 = vmul.f32 0.35355338, %v1473_v22  ;;  %v3654_v22 = vld [vmem:[%s5144_s9] ss:$0 sm:$0xff] }
 0x632   : > { %v3920_v23 = vpop.f32.mrf.mxu0 }
 0x633   : > { %v1478_v37 = vsel %vm993_vm6, %v1477_v35, -inf }
 0x634   : > { %v1080_v24 = vpop.f32.mrf.mxu1 }
 0x636   : > { %v3895_v25 = vpop.f32.mrf.mxu1 }
 0x638   : > { %v1159_v26 = vpop.f32.mrf.mxu1 }
 0x639   : > { %v1163_v27 = vmul.f32 0.35355338, %v1159_v26 }
 0x63a   : > { %v3900_v28 = vpop.f32.mrf.mxu1 }
 0x63b   : > { %v1164_v29 = vsel %vm993_vm6, %v1163_v27, -inf }
 0x63c   : > { %1165 = vmax.xlane.f32.xlu0 %v1164_v29 }
 0x652   : > { %1175 = vrot.lane.b32.xlu0 %v4610_v2, %s5173_s3  ;;  %s5208_s3 = smov 96  }
 0x656   : > { %1489 = vrot.lane.b32.xlu0 %v4610_v2, %s5170_s24  ;;  %s5174_s24 = smov 40  }
 0x65a   : > { %1641 = vrot.lane.b32.xlu0 %v4610_v2, %s5169_s2  ;;  %s5210_s2 = smov 88  }
 0x6c5   : > { %v1166_v30 = vpop.xlane.xlu0 %1165 }
 0x6c6   : > { %v1167_v31 = vsub.f32 %v1163_v27, %v1166_v30 }
 0x6c8   : > { %v1168_v32 = vmul.f32 1.442695, %v1167_v31 }
 0x6c9   : > { %v1176_v33 = vpop.permute.xlu0 %1175 }
 0x6ca   : > { %4178 = vpow2.f32 %v1168_v32  ;;  %3902 = vmatpush3.msk.msra.mxu1 %vm1011_vm5, %v1176_v33  ;;  %v1924_v33 = vld [vmem:[%s5147_s12 + $0x18] sm:$0xff] }
 0x6cb   : > { %3906 = vmatprep.subr.mxu1 %v4282_v50 }
 0x6cd   : > { %v1490_v54 = vpop.permute.xlu0 %1489 }
 0x6d1   : > { %v1642_v57 = vpop.permute.xlu0 %1641 }
 0x6d7   : > { %v4179_v34 = vpop.eup %4178 }
 0x6d8   : > { %v1170_v36 = vsel %vm993_vm6, %v4179_v34, 0.0 }
 0x6d9   : > { %1171 = vadd.xlane.f32.xlu1 %v1170_v36 }
 0x6dd   : > { %1479 = vmax.xlane.f32.xlu1 %v1478_v37 }
 0x762   : > { %v1172_v38 = vpop.xlane.xlu1 %1171 }
 0x763   : > { %4180 = vrcp.f32 %v1172_v38 }
 0x766   : > { %v1480_v39 = vpop.xlane.xlu1 %1479 }
 0x767   : > { %v1481_v40 = vsub.f32 %v1477_v35, %v1480_v39  ;;  %v1921_v35 = vld [vmem:[%s5147_s12] sm:$0xff] }
 0x769   : > { %v1482_v41 = vmul.f32 1.442695, %v1481_v40  ;;  %v3655_v40 = vld [vmem:[%s5145_s10] ss:$0 sm:$0xff] }
 0x76b   : > { %4182 = vpow2.f32 %v1482_v41 }
 0x770   : > { %v4181_v42 = vpop.eup %4180 }
 0x771   : > { %v1174_v44 = vmul.f32 %v4181_v42, %v4179_v34  ;;  %v1922_v34 = vld [vmem:[%s5147_s12 + $0x8] sm:$0xff]  ;;  %v3656_v42 = vld [vmem:[%s5146_s11] ss:$0 sm:$0xff] }
 0x773   : > { %3904 = vmatmul.mubr.msk.f32.vlgmr.msra.gmra.mxu1 %vm1007_vm7, %v1174_v44 }
 0x774   : > { %3908 = vmatprep.mubr.msk.f32.mxu1 %vm4283_vm2, %v4282_v50  ;;  %3907 = vmatpush3.msra.mxu1 %v1252_v47  ;;  %v2028_v47 = vld [vmem:[%s5149_s14 + $0x70] sm:$0xff] }
 0x775   : > { %3911 = vmatprep.subr.mxu1 %v4282_v50 }
 0x778   : > { %v4183_v45 = vpop.eup %4182 }
 0x779   : > { %v1484_v46 = vsel %vm993_vm6, %v4183_v45, 0.0 }
 0x77a   : > { %1485 = vadd.xlane.f32.xlu1 %v1484_v46  ;;  %v2029_v46 = vld [vmem:[%s5149_s14 + $0x78] sm:$0xff] }
 0x78b   : > { %1643 = vrot.lane.b32.xlu1 %v4610_v2, %s5175_s25  ;;  %s5216_s25 = smov 72  }
 0x803   : > { %v1486_v48 = vpop.xlane.xlu1 %1485 }
 0x804   : > { %4184 = vrcp.f32 %v1486_v48  ;;  %v2027_v48 = vld [vmem:[%s5149_s14 + $0x68] sm:$0xff] }
 0x807   : > { %v1644_v56 = vpop.permute.xlu1 %1643 }
 0x811   : > { %v4185_v53 = vpop.eup %4184 }
 0x812   : > { %v1488_v55 = vmul.f32 %v4185_v53, %v4183_v45  ;;  %v2023_v53 = vld [vmem:[%s5149_s14 + $0x48] sm:$0xff] }
 0x833   : > { %v1248_v51 = vpop.f32.mrf.mxu1 }
 0x834   : > { %3909 = vmatmul.mubr.msk.f32.vlgmr.msra.gmra.mxu1 %vm917_vm4, %v1248_v51  ;;  %v2025_v51 = vld [vmem:[%s5149_s14 + $0x58] sm:$0xff] }
 0x835   : > { %v3905_v52 = vpop.f32.mrf.mxu1  ;;  %3912 = vmatpush3.msra.mxu1 %v1084_v49  ;;  %3913 = vmatprep.mubr.msk.f32.mxu1 %vm4283_vm2, %v4282_v50  ;;  %v2026_v49 = vld [vmem:[%s5149_s14 + $0x60] sm:$0xff] }
 0x836   : > { %3921 = vmatprep.subr.mxu1 %v4282_v50  ;;  %v2024_v52 = vld [vmem:[%s5149_s14 + $0x50] sm:$0xff] }
 0x838   : > { %3914 = vmatmul.mubr.msk.f32.vlgmr.msra.gmra.mxu1 %vm917_vm4, %v1080_v24 }
 0x839   : > { %3922 = vmatpush3.msk.msra.mxu1 %vm1011_vm5, %v1490_v54  ;;  %3923 = vmatprep.mubr.msk.f32.mxu1 %vm4283_vm2, %v4282_v50  ;;  %v2022_v54 = vld [vmem:[%s5149_s14 + $0x40] sm:$0xff] }
 0x83a   : > { %3931 = vmatprep.subr.mxu1 %v4282_v50 }
 0x83c   : > { %3924 = vmatmul.mubr.msk.f32.vlgmr.msra.gmra.mxu1 %vm1007_vm7, %v1488_v55  ;;  %v2021_v55 = vld [vmem:[%s5149_s14 + $0x38] sm:$0xff] }
 0x83d   : > { %3932 = vmatpush3.xpose.msk.msra.mxu1 %vm917_vm4, %v1644_v56  ;;  %3933 = vmatprep.mubr.msk.f32.mxu1 %vm4283_vm2, %v4282_v50  ;;  %v2020_v56 = vld [vmem:[%s5149_s14 + $0x30] sm:$0xff] }
 0x83e   : > { %3941 = vmatprep.subr.mxu1 %v4282_v50 }
 0x840   : > { %3934 = vmatmul.mubr.msk.f32.vlgmr.msra.gmra.mxu1 %vm917_vm4, %v1642_v57  ;;  %v2019_v57 = vld [vmem:[%s5149_s14 + $0x28] sm:$0xff] }
 0x841   : > { %3943 = vmatprep.mubr.msk.f32.mxu1 %vm4283_vm2, %v4282_v50  ;;  %3942 = vmatpush3.msra.mxu1 %v1808_v13  ;;  %v3659_v13 = vld [vmem:[%s5150_s15] ss:$0 sm:$0xff] }
 0x842   : > { %3957 = vmatprep.subr.mxu1 %v4282_v50 }
 0x8f4   : > { %v1322_v59 = vpop.f32.mrf.mxu1 }
 0x8f6   : > { %v3910_v60 = vpop.f32.mrf.mxu1 }
 0x8f7   : > { %v2016_v60 = vld [vmem:[%s5149_s14 + $0x10] sm:$0xff] }
 0x8f8   : > { %v1395_v61 = vpop.f32.mrf.mxu1 }
 0x8f9   : > { %v1396_v62 = vadd.f32 %v1395_v61, %v1322_v59  ;;  %v2017_v59 = vld [vmem:[%s5149_s14 + $0x18] sm:$0xff]  ;;  %v2015_v61 = vld [vmem:[%s5149_s14 + $0x8] sm:$0xff] }
 0x8fa   : > { %v3915_v63 = vpop.f32.mrf.mxu1 }
 0x8fb   : > { %v3657_v63 = vld [vmem:[%s5148_s13] ss:$0 sm:$0xff] }
 0x8fc   : > { %v1562_v0 = vpop.f32.mrf.mxu1 }
 0x8fd   : > { %3929 = vmatmul.mubr.msk.f32.vlgmr.msra.gmra.mxu0 %vm917_vm4, %v1562_v0 }
 0x8fe   : > { %v3925_v1 = vpop.f32.mrf.mxu1  ;;  %3938 = vmatprep.mubr.msk.f32.mxu0 %vm4283_vm2, %v4282_v50 }
 0x900   : > { %v1715_v3 = vpop.f32.mrf.mxu1 }
 0x901   : > { %v1719_v4 = vmul.f32 0.35355338, %v1715_v3 }
 0x902   : > { %v3935_v5 = vpop.f32.mrf.mxu1 }
 0x903   : > { %v1720_v6 = vsel %vm993_vm6, %v1719_v4, -inf }
 0x904   : > { %1721 = vmax.xlane.f32.xlu0 %v1720_v6 }
 0x91a   : > { %1731 = vrot.lane.b32.xlu0 %v4610_v2, %s5174_s24  ;;  %s5211_s24 = smov 56  }
 0x98d   : > { %v1722_v7 = vpop.xlane.xlu0 %1721 }
 0x98e   : > { %v1723_v8 = vsub.f32 %v1719_v4, %v1722_v7 }
 0x990   : > { %v1724_v9 = vmul.f32 1.442695, %v1723_v8 }
 0x991   : > { %v1732_v10 = vpop.permute.xlu0 %1731 }
 0x992   : > { %4186 = vpow2.f32 %v1724_v9  ;;  %3937 = vmatpush3.msk.msra.mxu0 %vm1011_vm5, %v1732_v10 }
 0x993   : > { %3946 = vmatprep.subr.mxu0 %v4282_v50 }
 0x99f   : > { %v4187_v11 = vpop.eup %4186 }
 0x9a0   : > { %v1726_v12 = vsel %vm993_vm6, %v4187_v11, 0.0 }
 0x9a1   : > { %1727 = vadd.xlane.f32.xlu1 %v1726_v12 }
 0x9bd   : > { %v1636_v14 = vpop.f32.mrf.mxu0 }
 0x9be   : > { %v1640_v2 = vadd.f32 %v1636_v14, %v1396_v62  ;;  %v2014_v62 = vld [vmem:[%s5149_s14] sm:$0xff] }
 0x9bf   : > { %v3930_v15 = vpop.f32.mrf.mxu0 }
 0xa2a   : > { %v1728_v16 = vpop.xlane.xlu1 %1727 }
 0xa2b   : > { %4188 = vrcp.f32 %v1728_v16 }
 0xa38   : > { %v4189_v17 = vpop.eup %4188 }
 0xa39   : > { %v1730_v18 = vmul.f32 %v4189_v17, %v4187_v11 }
 0xa3b   : > { %3939 = vmatmul.mubr.msk.f32.vlgmr.msra.gmra.mxu0 %vm1007_vm7, %v1730_v18 }
 0xa3c   : > { %3954 = vmatprep.mubr.msk.f32.mxu0 %vm4283_vm2, %v4282_v50  ;;  %3947 = vmatpush3.msra.mxu0 %v1924_v33  ;;  %v3663_v33 = vld [vmem:[%s5206_s0 + $0x1] ss:$0 sm:$0xff] }
 0xa3d   : > { %3948 = vmatprep.subr.mxu0 %v4282_v50 }
 0xafb   : > { %v1804_v19 = vpop.f32.mrf.mxu0 }
 0xafc   : > { %3944 = vmatmul.mubr.msk.f32.vlgmr.msra.gmra.mxu1 %vm917_vm4, %v1804_v19 }
 0xafd   : > { %v3940_v20 = vpop.f32.mrf.mxu0  ;;  %3989 = vmatprep.mubr.msk.f32.mxu1 %vm4283_vm2, %v4282_v50  ;;  %3958 = vmatpush3.msra.mxu1 %v2029_v46 }
 0xafe   : > { %3959 = vmatprep.subr.mxu1 %v4282_v50 }
 0xaff   : > { %3960 = vmatpush3.msra.mxu1 %v2028_v47 }
 0xb00   : > { %3961 = vmatprep.subr.mxu1 %v4282_v50 }
 0xb01   : > { %3962 = vmatpush3.msra.mxu1 %v2027_v48 }
 0xb02   : > { %3963 = vmatprep.subr.mxu1 %v4282_v50 }
 0xb03   : > { %3964 = vmatpush3.msra.mxu1 %v2026_v49 }
 0xb04   : > { %3965 = vmatprep.subr.mxu1 %v4282_v50 }
 0xb05   : > { %3966 = vmatpush3.msra.mxu1 %v2025_v51 }
 0xb06   : > { %3967 = vmatprep.subr.mxu1 %v4282_v50 }
 0xb07   : > { %3968 = vmatpush3.msra.mxu1 %v2024_v52 }
 0xb08   : > { %3969 = vmatprep.subr.mxu1 %v4282_v50 }
 0xb09   : > { %3970 = vmatpush3.msra.mxu1 %v2023_v53 }
 0xb0a   : > { %3971 = vmatprep.subr.mxu1 %v4282_v50 }
 0xb0b   : > { %3972 = vmatpush3.msra.mxu1 %v2022_v54 }
 0xb0c   : > { %3973 = vmatprep.subr.mxu1 %v4282_v50 }
 0xb0d   : > { %3974 = vmatpush3.msra.mxu1 %v2021_v55 }
 0xb0e   : > { %3975 = vmatprep.subr.mxu1 %v4282_v50 }
 0xb0f   : > { %3976 = vmatpush3.msra.mxu1 %v2020_v56 }
 0xb10   : > { %3977 = vmatprep.subr.mxu1 %v4282_v50 }
 0xb11   : > { %3978 = vmatpush3.msra.mxu1 %v2019_v57  ;;  %v3675_v57 = vld [vmem:[%s5143_s8 + $0x20] sm:$0xff] }
 0xb12   : > { %3979 = vmatprep.subr.mxu1 %v4282_v50 }
 0xb13   : > { %3980 = vmatpush3.msra.mxu1 %v2018_v58 }
 0xb14   : > { %3981 = vmatprep.subr.mxu1 %v4282_v50 }
 0xb15   : > { %3982 = vmatpush3.msra.mxu1 %v2017_v59 }
 0xb16   : > { %3983 = vmatprep.subr.mxu1 %v4282_v50 }
 0xb17   : > { %3984 = vmatpush3.msra.mxu1 %v2016_v60 }
 0xb18   : > { %3985 = vmatprep.subr.mxu1 %v4282_v50 }
 0xb19   : > { %3986 = vmatpush3.msra.mxu1 %v2015_v61 }
 0xb1a   : > { %3987 = vmatprep.subr.mxu1 %v4282_v50 }
 0xb1b   : > { %3988 = vmatpush3.msra.mxu1 %v2014_v62 }
 0xb1c   : > { %4028 = vmatprep.subr.mxu1 %v4282_v50 }
 0xbbc   : > { %v1878_v21 = vpop.f32.mrf.mxu1 }
 0xbbd   : > { %v1882_v23 = vadd.f32 %v1878_v21, %v1640_v2 }
 0xbbe   : > { %v3945_v24 = vpop.f32.mrf.mxu1 }
 0xbbf   : > { %v1890_v25 = vadd.f32 %v3654_v22, %v1882_v23  ;;  %v3667_v23 = vld [vmem:[%s5203_s5 + $0x38] sm:$0xff]  ;;  %v3666_v24 = vld [vmem:[%s5203_s5 + $0x30] sm:$0xff] }
 0xbc1   : > { %v4715_v26 = vadd.f32 %v1890_v25, %v4570_v43  ;;  %v1923_v43 = vld [vmem:[%s5147_s12 + $0x10] sm:$0xff]  ;;  %v3665_v25 = vld [vmem:[%s5203_s5 + $0x28] sm:$0xff] }
 0xbc2   : > { %3949 = vmatpush3.msra.mxu0 %v1923_v43 }
 0xbc3   : > { %v1894_v27 = vsel %vm800_vm1, %v4715_v26, 0.0  ;;  %3950 = vmatprep.subr.mxu0 %v4282_v50 }
 0xbc4   : > { %1895 = vadd.xlane.f32.xlu1 %v1894_v27  ;;  %3951 = vmatpush3.msra.mxu0 %v1922_v34 }
 0xbc5   : > { %3952 = vmatprep.subr.mxu0 %v4282_v50 }
 0xbc6   : > { %3953 = vmatpush3.msra.mxu0 %v1921_v35  ;;  %v3669_v35 = vld [vmem:[%s5207_s7 + $0x1] ss:$0 sm:$0xff] }
 0xbc7   : > { %3992 = vmatprep.subr.mxu0 %v4282_v50 }
 0xc4d   : > { %v1896_v28 = vpop.xlane.xlu1 %1895 }
 0xc4e   : > { %v1897_v29 = vmul.f32 0.03125, %v1896_v28 }
 0xc50   : > { %v1898_v30 = vsub.f32 %v4715_v26, %v1897_v29 }
 0xc52   : > { %v1899_v31 = vmul.f32 %v1898_v30, %v1898_v30 }
 0xc54   : > { %v1900_v32 = vsel %vm800_vm1, %v1899_v31, 0.0  ;;  %v3662_v31 = vld [vmem:[%s5205_s1 + $0x1] ss:$0 sm:$0xff] }
 0xc55   : > { %1901 = vadd.xlane.f32.xlu1 %v1900_v32 }
 0xcde   : > { %v1902_v36 = vpop.xlane.xlu1 %1901 }
 0xcdf   : > { %v1903_v37 = vmul.f32 0.03125, %v1902_v36 }
 0xce1   : > { %v1904_v38 = vadd.f32 1e-06, %v1903_v37 }
 0xce3   : > { %4190 = vrsqrt.f32 %v1904_v38 }
 0xcf0   : > { %v4191_v39 = vpop.eup %4190 }
 0xcf1   : > { %v1906_v41 = vmul.f32 %v4191_v39, %v1898_v30 }
 0xcf3   : > { %v1913_v44 = vmul.f32 %v3655_v40, %v1906_v41 }
 0xcf5   : > { %v1920_v45 = vadd.f32 %v3656_v42, %v1913_v44 }
 0xcf7   : > { %3955 = vmatmul.mubr.msk.f32.vlgmr.msra.gmra.mxu0 %vm840_vm3, %v1920_v45 }
 0xcf8   : > { %4000 = vmatprep.mubr.msk.f32.mxu0 %vm4283_vm2, %v4282_v50  ;;  %3993 = vmatpush3.msra.mxu0 %v3667_v23 }
 0xcf9   : > { %3994 = vmatprep.subr.mxu0 %v4282_v50 }
 0xcfa   : > { %3995 = vmatpush3.msra.mxu0 %v3666_v24 }
 0xcfb   : > { %3996 = vmatprep.subr.mxu0 %v4282_v50 }
 0xcfc   : > { %3997 = vmatpush3.msra.mxu0 %v3665_v25 }
 0xcfd   : > { %3998 = vmatprep.subr.mxu0 %v4282_v50 }
 0xdb7   : > { %v2001_v0 = vpop.f32.mrf.mxu0 }
 0xdb8   : > { %v2002_v1 = vadd.f32 %v3657_v63, %v2001_v0 }
 0xdb9   : > { %v3956_v3 = vpop.f32.mrf.mxu0 }
 0xdba   : > { %v2006_v4 = vmul.f32 0.044715, %v2002_v1  ;;  %v2005_v10 = vmul.f32 0.5, %v2002_v1 }
 0xdbc   : > { %v2007_v5 = vmul.f32 %v2006_v4, %v2002_v1 }
 0xdbe   : > { %v2008_v6 = vmul.f32 %v2007_v5, %v2002_v1 }
 0xdc0   : > { %v2009_v7 = vadd.f32 %v2008_v6, %v2002_v1 }
 0xdc2   : > { %v2010_v8 = vmul.f32 0.7978846, %v2009_v7 }
 0xdc4   : > { %4192 = vtanh.f32 %v2010_v8 }
 0xdd1   : > { %v4193_v9 = vpop.eup %4192 }
 0xdd2   : > { %v2012_v11 = vadd.f32 1.0, %v4193_v9 }
 0xdd4   : > { %v2013_v12 = vmul.f32 %v2012_v11, %v2005_v10 }
 0xdd6   : > { %3990 = vmatmul.mubr.f32.vlgmr.msra.gmra.mxu1 %v2013_v12  ;;  %v3680_v12 = vld [vmem:[%s5143_s8 + $0x28] sm:$0xff] }
 0xdd7   : > { %4030 = vmatprep.mubr.msk.f32.mxu1 %vm4283_vm2, %v4282_v50  ;;  %4029 = vmatpush3.msra.mxu1 %v3675_v57 }
 0xdd8   : > { %4038 = vmatprep.subr.mxu1 %v4282_v50 }
 0xe96   : > { %v2103_v14 = vpop.f32.mrf.mxu1 }
 0xe97   : > { %v2104_v2 = vadd.f32 %v3659_v13, %v2103_v14 }
 0xe98   : > { %v3991_v15 = vpop.f32.mrf.mxu1 }
 0xe99   : > { %v4819_v16 = vadd.f32 %v2104_v2, %v4715_v26  ;;  %v3664_v26 = vld [vmem:[%s5203_s5 + $0x20] sm:$0xff] }
 0xe9a   : > { %3999 = vmatpush3.msra.mxu0 %v3664_v26 }
 0xe9b   : > { %v2112_v17 = vsel %vm800_vm1, %v4819_v16, 0.0  ;;  %4003 = vmatprep.subr.mxu0 %v4282_v50 }
 0xe9c   : > { %2113 = vadd.xlane.f32.xlu0 %v2112_v17 }
 0xf25   : > { %v2114_v18 = vpop.xlane.xlu0 %2113 }
 0xf26   : > { %v2115_v19 = vmul.f32 0.03125, %v2114_v18 }
 0xf28   : > { %v2116_v20 = vsub.f32 %v4819_v16, %v2115_v19 }
 0xf2a   : > { %v2117_v21 = vmul.f32 %v2116_v20, %v2116_v20 }
 0xf2c   : > { %v2118_v22 = vsel %vm800_vm1, %v2117_v21, 0.0 }
 0xf2d   : > { %2119 = vadd.xlane.f32.xlu1 %v2118_v22 }
 0xfb6   : > { %v2120_v27 = vpop.xlane.xlu1 %2119 }
 0xfb7   : > { %v2121_v28 = vmul.f32 0.03125, %v2120_v27 }
 0xfb9   : > { %v2122_v29 = vadd.f32 1e-06, %v2121_v28 }
 0xfbb   : > { %4194 = vrsqrt.f32 %v2122_v29 }
 0xfc8   : > { %v4195_v30 = vpop.eup %4194 }
 0xfc9   : > { %v2124_v32 = vmul.f32 %v4195_v30, %v2116_v20 }
 0xfcb   : > { %v2131_v43 = vmul.f32 %v3662_v31, %v2124_v32 }
 0xfcd   : > { %v2138_v34 = vadd.f32 %v3663_v33, %v2131_v43  ;;  %v3687_v43 = vld [vmem:[%s5143_s8 + $0x30] sm:$0xff] }
 0xfcf   : > { %4001 = vmatmul.mubr.msk.f32.vlgmr.msra.gmra.mxu0 %vm840_vm3, %v2138_v34 }
 0xfd0   : > { %4005 = vmatprep.mubr.msk.f32.mxu0 %vm4283_vm2, %v4282_v50 }
0x108f   : > { %v2221_v36 = vpop.f32.mrf.mxu0 }
0x1090   : > { %v4853_v37 = vadd.f32 %v3669_v35, %v2221_v36 }
0x1091   : > { %v4002_v38 = vpop.f32.mrf.mxu0 }
0x1092   : > { %2314 = vrot.lane.b32.xlu0 %v4853_v37, %s4284_s29  ;;  %2226 = vrot.lane.b32.xlu1 %v4853_v37, %s5208_s3  ;;  %s5209_s29 = smov 120  }
0x1104   : > { %v2227_v39 = vpop.permute.xlu1 %2226  ;;  %v2315_v40 = vpop.permute.xlu0 %2314 }
0x1105   : > { %4004 = vmatpush3.xpose.msk.msra.mxu0 %vm917_vm4, %v2227_v39 }
0x1106   : > { %4008 = vmatprep.subr.mxu0 %v4282_v50 }
0x1108   : > { %4006 = vmatmul.mubr.msk.f32.vlgmr.msra.gmra.mxu0 %vm917_vm4, %v4853_v37 }
0x1109   : > { %4009 = vmatpush3.msk.msra.mxu0 %vm1011_vm5, %v2315_v40  ;;  %4010 = vmatprep.mubr.msk.f32.mxu0 %vm4283_vm2, %v4282_v50 }
0x110a   : > { %4013 = vmatprep.subr.mxu0 %v4282_v50 }
0x11c8   : > { %v2298_v41 = vpop.f32.mrf.mxu0 }
0x11c9   : > { %v2302_v42 = vmul.f32 0.35355338, %v2298_v41 }
0x11ca   : > { %v4007_v44 = vpop.f32.mrf.mxu0 }
0x11cb   : > { %v2303_v45 = vsel %vm993_vm6, %v2302_v42, -inf }
0x11cc   : > { %2304 = vmax.xlane.f32.xlu1 %v2303_v45 }
0x11dd   : > { %2393 = vrot.lane.b32.xlu1 %v4853_v37, %s5209_s29  ;;  %s5214_s29 = smov 48  }
0x1255   : > { %v2305_v46 = vpop.xlane.xlu1 %2304 }
0x1256   : > { %v2306_v47 = vsub.f32 %v2302_v42, %v2305_v46 }
0x1258   : > { %v2307_v48 = vmul.f32 1.442695, %v2306_v47 }
0x1259   : > { %v2394_v56 = vpop.permute.xlu1 %2393 }
0x125a   : > { %4196 = vpow2.f32 %v2307_v48  ;;  %v3693_v48 = vld [vmem:[%s5143_s8 + $0x38] sm:$0xff] }
0x1267   : > { %v4197_v49 = vpop.eup %4196 }
0x1268   : > { %v2309_v51 = vsel %vm993_vm6, %v4197_v49, 0.0 }
0x1269   : > { %2310 = vadd.xlane.f32.xlu0 %v2309_v51 }
0x127f   : > { %2395 = vrot.lane.b32.xlu0 %v4853_v37, %s5210_s2  ;;  %s5215_s2 = smov 104  }
0x12f2   : > { %v2311_v52 = vpop.xlane.xlu0 %2310 }
0x12f3   : > { %4198 = vrcp.f32 %v2311_v52 }
0x12f6   : > { %v2396_v55 = vpop.permute.xlu0 %2395 }
0x1300   : > { %v4199_v53 = vpop.eup %4198 }
0x1301   : > { %v2313_v54 = vmul.f32 %v4199_v53, %v4197_v49 }
0x1303   : > { %4011 = vmatmul.mubr.msk.f32.vlgmr.msra.gmra.mxu0 %vm1007_vm7, %v2313_v54 }
0x1304   : > { %4014 = vmatpush3.xpose.msk.msra.mxu0 %vm917_vm4, %v2396_v55  ;;  %4015 = vmatprep.mubr.msk.f32.mxu0 %vm4283_vm2, %v4282_v50 }
0x1305   : > { %4018 = vmatprep.subr.mxu0 %v4282_v50 }
0x1307   : > { %4016 = vmatmul.mubr.msk.f32.vlgmr.msra.gmra.mxu0 %vm917_vm4, %v2394_v56 }
0x1308   : > { %4020 = vmatprep.mubr.msk.f32.mxu0 %vm4283_vm2, %v4282_v50 }
0x13c3   : > { %v2387_v58 = vpop.f32.mrf.mxu0 }
0x13c4   : > { %4031 = vmatmul.mubr.msk.f32.vlgmr.msra.gmra.mxu1 %vm917_vm4, %v2387_v58 }
0x13c5   : > { %v4012_v59 = vpop.f32.mrf.mxu0  ;;  %4040 = vmatprep.mubr.msk.f32.mxu1 %vm4283_vm2, %v4282_v50 }
0x13c6   : > { %v3696_v59 = vld [vmem:[%s5144_s9 + $0x1] ss:$0 sm:$0xff] }
0x13c7   : > { %v2467_v60 = vpop.f32.mrf.mxu0 }
0x13c8   : > { %v2471_v61 = vmul.f32 0.35355338, %v2467_v60 }
0x13c9   : > { %v4017_v62 = vpop.f32.mrf.mxu0 }
0x13ca   : > { %v2472_v63 = vsel %vm993_vm6, %v2471_v61, -inf }
0x13cb   : > { %2473 = vmax.xlane.f32.xlu0 %v2472_v63 }
0x13e1   : > { %2483 = vrot.lane.b32.xlu0 %v4853_v37, %s5211_s24 }
0x13e5   : > { %2707 = vrot.lane.b32.xlu0 %v4853_v37, %s5212_s22  ;;  %s5217_s22 = smov 40  }
0x1454   : > { %v2474_v0 = vpop.xlane.xlu0 %2473 }
0x1455   : > { %v2475_v1 = vsub.f32 %v2471_v61, %v2474_v0 }
0x1457   : > { %v2476_v3 = vmul.f32 1.442695, %v2475_v1 }
0x1458   : > { %v2484_v4 = vpop.permute.xlu0 %2483 }
0x1459   : > { %4200 = vpow2.f32 %v2476_v3  ;;  %4019 = vmatpush3.msk.msra.mxu0 %vm1011_vm5, %v2484_v4 }
0x145a   : > { %4023 = vmatprep.subr.mxu0 %v4282_v50 }
0x145c   : > { %v2708_v15 = vpop.permute.xlu0 %2707 }
0x1466   : > { %v4201_v5 = vpop.eup %4200 }
0x1467   : > { %v2478_v6 = vsel %vm993_vm6, %v4201_v5, 0.0 }
0x1468   : > { %2479 = vadd.xlane.f32.xlu1 %v2478_v6 }
0x1479   : > { %2709 = vrot.lane.b32.xlu1 %v4853_v37, %s5213_s23 }
0x1484   : > { %v4898_v7 = vpop.f32.mrf.mxu1 }
0x1486   : > { %v4032_v8 = vpop.f32.mrf.mxu1 }
0x1487   : > { %v3702_v8 = vld [vmem:[%s5147_s12 + $0x28] sm:$0xff] }
0x14f1   : > { %v2480_v9 = vpop.xlane.xlu1 %2479 }
0x14f2   : > { %4202 = vrcp.f32 %v2480_v9  ;;  %v3701_v9 = vld [vmem:[%s5147_s12 + $0x20] sm:$0xff] }
0x14f5   : > { %v2710_v14 = vpop.permute.xlu1 %2709 }
0x14ff   : > { %v4203_v10 = vpop.eup %4202 }
0x1500   : > { %v2482_v11 = vmul.f32 %v4203_v10, %v4201_v5 }
0x1502   : > { %4021 = vmatmul.mubr.msk.f32.vlgmr.msra.gmra.mxu0 %vm1007_vm7, %v2482_v11 }
0x1503   : > { %4024 = vmatpush3.msra.mxu0 %v3680_v12  ;;  %4025 = vmatprep.mubr.msk.f32.mxu0 %vm4283_vm2, %v4282_v50 }
0x1504   : > { %4033 = vmatprep.subr.mxu0 %v4282_v50 }
0x15c2   : > { %v2556_v13 = vpop.f32.mrf.mxu0 }
0x15c3   : > { %4026 = vmatmul.mubr.msk.f32.vlgmr.msra.gmra.mxu0 %vm917_vm4, %v2556_v13 }
0x15c4   : > { %4034 = vmatpush3.xpose.msk.msra.mxu0 %vm917_vm4, %v2710_v14  ;;  %v4022_v2 = vpop.f32.mrf.mxu0  ;;  %4035 = vmatprep.mubr.msk.f32.mxu0 %vm4283_vm2, %v4282_v50  ;;  %v3699_v14 = vld [vmem:[%s5145_s10 + $0x1] ss:$0 sm:$0xff] }
0x15c5   : > { %4043 = vmatprep.subr.mxu0 %v4282_v50 }
0x15c7   : > { %4036 = vmatmul.mubr.msk.f32.vlgmr.msra.gmra.mxu0 %vm917_vm4, %v2708_v15  ;;  %v3700_v15 = vld [vmem:[%s5146_s11 + $0x1] ss:$0 sm:$0xff] }
0x15c8   : > { %4045 = vmatprep.mubr.msk.f32.mxu0 %vm4283_vm2, %v4282_v50  ;;  %4044 = vmatpush3.msra.mxu0 %v3687_v43  ;;  %v3708_v43 = vld [vmem:[%s5149_s14 + $0x80] sm:$0xff] }
0x15c9   : > { %4053 = vmatprep.subr.mxu0 %v4282_v50 }
0x1683   : > { %v2630_v17 = vpop.f32.mrf.mxu0 }
0x1684   : > { %v2704_v49 = vadd.f32 %v4898_v7, %v2630_v17  ;;  %v3704_v7 = vld [vmem:[%s5147_s12 + $0x38] sm:$0xff] }
0x1685   : > { %v4027_v18 = vpop.f32.mrf.mxu0 }
0x1687   : > { %v2781_v19 = vpop.f32.mrf.mxu0 }
0x1688   : > { %v2785_v20 = vmul.f32 0.35355338, %v2781_v19  ;;  %v3723_v19 = vld [vmem:[%s5149_s14 + $0xf8] sm:$0xff] }
0x1689   : > { %v4037_v21 = vpop.f32.mrf.mxu0 }
0x168a   : > { %v2786_v22 = vsel %vm993_vm6, %v2785_v20, -inf  ;;  %v3721_v21 = vld [vmem:[%s5149_s14 + $0xe8] sm:$0xff] }
0x168b   : > { %2787 = vmax.xlane.f32.xlu0 %v2786_v22  ;;  %v3720_v22 = vld [vmem:[%s5149_s14 + $0xe0] sm:$0xff] }
0x16a1   : > { %2797 = vrot.lane.b32.xlu0 %v4853_v37, %s5214_s29  ;;  %s5218_s29 = sld [smem:[#allocation19_spill]] }
0x16a5   : > { %2949 = vrot.lane.b32.xlu0 %v4853_v37, %s5215_s2 }
0x16a7   : > { %s5219_s2 = smov %s5218_s29 }
0x1714   : > { %v2788_v23 = vpop.xlane.xlu0 %2787 }
0x1715   : > { %v2789_v24 = vsub.f32 %v2785_v20, %v2788_v23  ;;  %v3722_v20 = vld [vmem:[%s5149_s14 + $0xf0] sm:$0xff]  ;;  %v3719_v23 = vld [vmem:[%s5149_s14 + $0xd8] sm:$0xff] }
0x1717   : > { %v2790_v25 = vmul.f32 1.442695, %v2789_v24  ;;  %v3718_v24 = vld [vmem:[%s5149_s14 + $0xd0] sm:$0xff] }
0x1718   : > { %v2798_v26 = vpop.permute.xlu0 %2797 }
0x1719   : > { %4204 = vpow2.f32 %v2790_v25  ;;  %4039 = vmatpush3.msk.msra.mxu1 %vm1011_vm5, %v2798_v26  ;;  %v3717_v25 = vld [vmem:[%s5149_s14 + $0xc8] sm:$0xff]  ;;  %v3716_v26 = vld [vmem:[%s5149_s14 + $0xc0] sm:$0xff] }
0x171a   : > { %4048 = vmatprep.subr.mxu1 %v4282_v50 }
0x171c   : > { %v2950_v33 = vpop.permute.xlu0 %2949 }
0x1726   : > { %v4205_v27 = vpop.eup %4204 }
0x1727   : > { %v2792_v28 = vsel %vm993_vm6, %v4205_v27, 0.0 }
0x1728   : > { %2793 = vadd.xlane.f32.xlu1 %v2792_v28  ;;  %v3714_v28 = vld [vmem:[%s5149_s14 + $0xb0] sm:$0xff] }
0x1739   : > { %2951 = vrot.lane.b32.xlu1 %v4853_v37, %s5216_s25  ;;  %s674_s25 = sand.u32 1, %s4272_s28  }
0x173a   : > { %s675_s23 = scalar_lea.vmem [#allocation2], %s674_s25  ;;  %s3556_s5 = scalar_lea.sflag [#allocation3], %s674_s25 }
0x173b   : > { %s3568_s0 = sshll.u32 %s675_s23, 4  ;;  %s3569_s0 = int_to_ptr.vmem [resolvable:$true] %s3568_s0 }
0x173c   : > { %s4220_s7 = scalar_lea.vmem %s3569_s0, 16 }
0x173d   : > { %p4221_p11 = scmp.ne.s32.totalorder %s3569_s0, %s4220_s7 }
0x173f   : > { %p4222_p12 = pnand %p4221_p11, %p4449_p5 }
0x1741   : > { %p4223_p13 = pneg %p4222_p12 }
0x17b1   : > { %v2794_v29 = vpop.xlane.xlu1 %2793 }
0x17b2   : > { %4206 = vrcp.f32 %v2794_v29  ;;  %v3713_v29 = vld [vmem:[%s5149_s14 + $0xa8] sm:$0xff] }
0x17b5   : > { %v2952_v32 = vpop.permute.xlu1 %2951 }
0x17bf   : > { %v4207_v30 = vpop.eup %4206 }
0x17c0   : > { %v2796_v31 = vmul.f32 %v4207_v30, %v4205_v27  ;;  %v3715_v27 = vld [vmem:[%s5149_s14 + $0xb8] sm:$0xff]  ;;  %v3712_v30 = vld [vmem:[%s5149_s14 + $0xa0] sm:$0xff] }
0x17c2   : > { %4041 = vmatmul.mubr.msk.f32.vlgmr.msra.gmra.mxu1 %vm1007_vm7, %v2796_v31  ;;  %v3711_v31 = vld [vmem:[%s5149_s14 + $0x98] sm:$0xff] }
0x17c3   : > { %4049 = vmatpush3.xpose.msk.msra.mxu1 %vm917_vm4, %v2952_v32  ;;  %4050 = vmatprep.mubr.msk.f32.mxu1 %vm4283_vm2, %v4282_v50  ;;  %v3710_v32 = vld [vmem:[%s5149_s14 + $0x90] sm:$0xff] }
0x17c4   : > { %4058 = vmatprep.subr.mxu1 %v4282_v50 }
0x17c6   : > { %4051 = vmatmul.mubr.msk.f32.vlgmr.msra.gmra.mxu1 %vm917_vm4, %v2950_v33  ;;  %v3709_v33 = vld [vmem:[%s5149_s14 + $0x88] sm:$0xff] }
0x17c7   : > { %4060 = vmatprep.mubr.msk.f32.mxu1 %vm4283_vm2, %v4282_v50  ;;  %4059 = vmatpush3.msra.mxu1 %v3693_v48 }
0x17c8   : > { %4074 = vmatprep.subr.mxu1 %v4282_v50 }
0x1882   : > { %v2870_v34 = vpop.f32.mrf.mxu1 }
0x1883   : > { %4046 = vmatmul.mubr.msk.f32.vlgmr.msra.gmra.mxu0 %vm917_vm4, %v2870_v34  ;;  %v3706_v34 = vld [vmem:[%s5148_s13 + $0x1] ss:$0 sm:$0xff] }
0x1884   : > { %v4042_v35 = vpop.f32.mrf.mxu1  ;;  %4055 = vmatprep.mubr.msk.f32.mxu0 %vm4283_vm2, %v4282_v50 }
0x1886   : > { %v3023_v36 = vpop.f32.mrf.mxu1 }
0x1887   : > { %v3027_v38 = vmul.f32 0.35355338, %v3023_v36 }
0x1888   : > { %v4052_v39 = vpop.f32.mrf.mxu1 }
0x1889   : > { %v3028_v40 = vsel %vm993_vm6, %v3027_v38, -inf }
0x188a   : > { %3029 = vmax.xlane.f32.xlu0 %v3028_v40 }
0x18a0   : > { %3039 = vrot.lane.b32.xlu0 %v4853_v37, %s5217_s22  ;;  %s3729_s22 = sshll.u32 %s4432_s4, 4  ;;  %s4295_s4 = smov [#allocation2]  }
0x18a1   : > { %s5100_s1 = scalar_lea.hbm %s5218_s29, %s3729_s22  ;;  %s4224_s26 = sshll.u32 %s4295_s4, 4  ;;  %s4225_s26 = int_to_ptr.vmem [resolvable:$false] %s4224_s26 }
0x18a2   : > { %s4226_s24 = scalar_lea.vmem %s4225_s26, 32  ;;  %p4227_p0 = scmp.lt.s32.totalorder %s3569_s0, %s4225_s26 }
0x18a3   : > { %p4228_p1 = scmp.lt.s32.totalorder %s4226_s24, %s4220_s7 }
0x18a5   : > { %p4229_p2 = por %p4228_p1, %p4227_p0 }
0x18a7   : > { %p4230_p3 = pnand %p4229_p2, %p4223_p13 }
0x1913   : > { %v3030_v41 = vpop.xlane.xlu0 %3029 }
0x1914   : > { %v3031_v42 = vsub.f32 %v3027_v38, %v3030_v41 }
0x1916   : > { %v3032_v44 = vmul.f32 1.442695, %v3031_v42 }
0x1917   : > { %v3040_v45 = vpop.permute.xlu0 %3039 }
0x1918   : > { %4208 = vpow2.f32 %v3032_v44  ;;  %4054 = vmatpush3.msk.msra.mxu0 %vm1011_vm5, %v3040_v45 }
0x1919   : > { %4063 = vmatprep.subr.mxu0 %v4282_v50 }
0x1925   : > { %v4209_v46 = vpop.eup %4208 }
0x1926   : > { %v3034_v47 = vsel %vm993_vm6, %v4209_v46, 0.0 }
0x1927   : > { %3035 = vadd.xlane.f32.xlu1 %v3034_v47 }
0x1943   : > { %v2944_v37 = vpop.f32.mrf.mxu0 }
0x1944   : > { %v2948_v51 = vadd.f32 %v2944_v37, %v2704_v49  ;;  %v3725_v49 = vld [vmem:[%s5150_s15 + $0x1] ss:$0 sm:$0xff] }
0x1945   : > { %v4047_v52 = vpop.f32.mrf.mxu0 }
0x19b0   : > { %v3036_v53 = vpop.xlane.xlu1 %3035 }
0x19b1   : > { %4210 = vrcp.f32 %v3036_v53 }
0x19be   : > { %v4211_v54 = vpop.eup %4210 }
0x19bf   : > { %v3038_v55 = vmul.f32 %v4211_v54, %v4209_v46 }
0x19c1   : > { %4056 = vmatmul.mubr.msk.f32.vlgmr.msra.gmra.mxu0 %vm1007_vm7, %v3038_v55 }
0x19c2   : > { %4071 = vmatprep.mubr.msk.f32.mxu0 %vm4283_vm2, %v4282_v50  ;;  %4064 = vmatpush3.msra.mxu0 %v3704_v7 }
0x19c3   : > { %4065 = vmatprep.subr.mxu0 %v4282_v50 }
0x1a81   : > { %v3112_v56 = vpop.f32.mrf.mxu0 }
0x1a82   : > { %4061 = vmatmul.mubr.msk.f32.vlgmr.msra.gmra.mxu1 %vm917_vm4, %v3112_v56 }
0x1a83   : > { %v4057_v57 = vpop.f32.mrf.mxu0  ;;  %4106 = vmatprep.mubr.msk.f32.mxu1 %vm4283_vm2, %v4282_v50  ;;  %4075 = vmatpush3.msra.mxu1 %v3723_v19 }
0x1a84   : > { %4076 = vmatprep.subr.mxu1 %v4282_v50 }
0x1a85   : > { %4077 = vmatpush3.msra.mxu1 %v3722_v20 }
0x1a86   : > { %4078 = vmatprep.subr.mxu1 %v4282_v50 }
0x1a87   : > { %4079 = vmatpush3.msra.mxu1 %v3721_v21 }
0x1a88   : > { %4080 = vmatprep.subr.mxu1 %v4282_v50 }
0x1a89   : > { %4081 = vmatpush3.msra.mxu1 %v3720_v22  ;;  %v3457_v22 = vld [vmem:[%s5153_s18] sm:$0x1] }
0x1a8a   : > { %4082 = vmatprep.subr.mxu1 %v4282_v50 }
0x1a8b   : > { %4083 = vmatpush3.msra.mxu1 %v3719_v23 }
0x1a8c   : > { %4084 = vmatprep.subr.mxu1 %v4282_v50 }
0x1a8d   : > { %4085 = vmatpush3.msra.mxu1 %v3718_v24  ;;  %v3458_v24 = vld [vmem:[%s5154_s19] sm:$0x1] }
0x1a8e   : > { %4086 = vmatprep.subr.mxu1 %v4282_v50 }
0x1a8f   : > { %4087 = vmatpush3.msra.mxu1 %v3717_v25 }
0x1a90   : > { %4088 = vmatprep.subr.mxu1 %v4282_v50 }
0x1a91   : > { %4089 = vmatpush3.msra.mxu1 %v3716_v26 }
0x1a92   : > { %4090 = vmatprep.subr.mxu1 %v4282_v50 }
0x1a93   : > { %4091 = vmatpush3.msra.mxu1 %v3715_v27 }
0x1a94   : > { %4092 = vmatprep.subr.mxu1 %v4282_v50 }
0x1a95   : > { %4093 = vmatpush3.msra.mxu1 %v3714_v28 }
0x1a96   : > { %4094 = vmatprep.subr.mxu1 %v4282_v50 }
0x1a97   : > { %4095 = vmatpush3.msra.mxu1 %v3713_v29 }
0x1a98   : > { %4096 = vmatprep.subr.mxu1 %v4282_v50 }
0x1a99   : > { %4097 = vmatpush3.msra.mxu1 %v3712_v30 }
0x1a9a   : > { %4098 = vmatprep.subr.mxu1 %v4282_v50 }
0x1a9b   : > { %4099 = vmatpush3.msra.mxu1 %v3711_v31 }
0x1a9c   : > { %4100 = vmatprep.subr.mxu1 %v4282_v50 }
0x1a9d   : > { %4101 = vmatpush3.msra.mxu1 %v3710_v32 }
0x1a9e   : > { %4102 = vmatprep.subr.mxu1 %v4282_v50 }
0x1a9f   : > { %4103 = vmatpush3.msra.mxu1 %v3709_v33 }
0x1aa0   : > { %4104 = vmatprep.subr.mxu1 %v4282_v50 }
0x1aa1   : > { %4105 = vmatpush3.msra.mxu1 %v3708_v43 }
0x1b42   : > { %v3186_v58 = vpop.f32.mrf.mxu1 }
0x1b43   : > { %v3190_v60 = vadd.f32 %v3186_v58, %v2948_v51 }
0x1b44   : > { %v4062_v61 = vpop.f32.mrf.mxu1 }
0x1b45   : > { %v3199_v62 = vadd.f32 %v3696_v59, %v3190_v60 }
0x1b47   : > { %v4961_v63 = vadd.f32 %v3199_v62, %v4819_v16  ;;  %v3703_v16 = vld [vmem:[%s5147_s12 + $0x30] sm:$0xff] }
0x1b48   : > { %4066 = vmatpush3.msra.mxu0 %v3703_v16 }
0x1b49   : > { %v3205_v0 = vsel %vm800_vm1, %v4961_v63, 0.0  ;;  %4067 = vmatprep.subr.mxu0 %v4282_v50 }
0x1b4a   : > { %3206 = vadd.xlane.f32.xlu1 %v3205_v0  ;;  %4068 = vmatpush3.msra.mxu0 %v3702_v8 }
0x1b4b   : > { %4069 = vmatprep.subr.mxu0 %v4282_v50 }
0x1b4c   : > { %4070 = vmatpush3.msra.mxu0 %v3701_v9 }
0x1b4d   : > { %4109 = vmatprep.subr.mxu0 %v4282_v50 }
0x1bd3   : > { %v3207_v1 = vpop.xlane.xlu1 %3206 }
0x1bd4   : > { %v3208_v3 = vmul.f32 0.03125, %v3207_v1  ;;  %v3726_v1 = vld [vmem:[%s5151_s16] ss:$0 sm:$0xff] }
0x1bd6   : > { %v3209_v4 = vsub.f32 %v4961_v63, %v3208_v3  ;;  %v3727_v3 = vld [vmem:[%s5152_s17] ss:$0 sm:$0xff] }
0x1bd8   : > { %v3210_v5 = vmul.f32 %v3209_v4, %v3209_v4 }
0x1bda   : > { %v3211_v6 = vsel %vm800_vm1, %v3210_v5, 0.0 }
0x1bdb   : > { %3212 = vadd.xlane.f32.xlu1 %v3211_v6 }
0x1c64   : > { %v3213_v10 = vpop.xlane.xlu1 %3212 }
0x1c65   : > { %v3214_v11 = vmul.f32 0.03125, %v3213_v10 }
0x1c67   : > { %v3215_v12 = vadd.f32 1e-06, %v3214_v11 }
0x1c69   : > { %4212 = vrsqrt.f32 %v3215_v12 }
0x1c76   : > { %v4213_v13 = vpop.eup %4212 }
0x1c77   : > { %v3217_v2 = vmul.f32 %v4213_v13, %v3209_v4 }
0x1c79   : > { %v3224_v17 = vmul.f32 %v3699_v14, %v3217_v2  ;;  %v3478_v14 = vld [vmem:[%s5155_s20 + $0x18] sm:$0xff]  ;;  %v3477_v2 = vld [vmem:[%s5155_s20 + $0x10] sm:$0xff] }
0x1c7b   : > { %v3231_v18 = vadd.f32 %v3700_v15, %v3224_v17  ;;  %v3476_v15 = vld [vmem:[%s5155_s20 + $0x8] sm:$0xff]  ;;  %v3475_v17 = vld [vmem:[%s5155_s20] sm:$0xff] }
0x1c7d   : > { %4072 = vmatmul.mubr.msk.f32.vlgmr.msra.gmra.mxu0 %vm840_vm3, %v3231_v18 }
0x1c7e   : > { %4117 = vmatprep.mubr.msk.f32.mxu0 %vm4283_vm2, %v4282_v50  ;;  %4110 = vmatpush3.msra.mxu0 %v3478_v14 }
0x1c7f   : > { %4111 = vmatprep.subr.mxu0 %v4282_v50 }
0x1c80   : > { %4112 = vmatpush3.msra.mxu0 %v3477_v2 }
0x1c81   : > { %4113 = vmatprep.subr.mxu0 %v4282_v50 }
0x1c82   : > { %4114 = vmatpush3.msra.mxu0 %v3476_v15 }
0x1c83   : > { %4115 = vmatprep.subr.mxu0 %v4282_v50  ;;  %v3479_v50 = vld [vmem:[%s5156_s21] sm:$0x1] }
0x1c84   : > { %4116 = vmatpush3.msra.mxu0 %v3475_v17 }
0x1d3d   : > { %v3314_v35 = vpop.f32.mrf.mxu0 }
0x1d3e   : > { %v3315_v36 = vadd.f32 %v3706_v34, %v3314_v35 }
0x1d3f   : > { %v4073_v38 = vpop.f32.mrf.mxu0 }
0x1d40   : > { %v3319_v39 = vmul.f32 0.044715, %v3315_v36  ;;  %v3318_v46 = vmul.f32 0.5, %v3315_v36 }
0x1d42   : > { %v3320_v40 = vmul.f32 %v3319_v39, %v3315_v36 }
0x1d44   : > { %v3321_v41 = vmul.f32 %v3320_v40, %v3315_v36 }
0x1d46   : > { %v3322_v42 = vadd.f32 %v3321_v41, %v3315_v36 }
0x1d48   : > { %v3323_v44 = vmul.f32 0.7978846, %v3322_v42 }
0x1d4a   : > { %4214 = vtanh.f32 %v3323_v44 }
0x1d57   : > { %v4215_v45 = vpop.eup %4214 }
0x1d58   : > { %v3325_v47 = vadd.f32 1.0, %v4215_v45 }
0x1d5a   : > { %v3326_v48 = vmul.f32 %v3325_v47, %v3318_v46 }
0x1d5c   : > { %4107 = vmatmul.mubr.f32.vlgmr.msra.gmra.mxu1 %v3326_v48 }
0x1e1c   : > { %v3418_v37 = vpop.f32.mrf.mxu1 }
0x1e1d   : > { %v3419_v51 = vadd.f32 %v3725_v49, %v3418_v37 }
0x1e1e   : > { %v4108_v52 = vpop.f32.mrf.mxu1 }
0x1e1f   : > { %v3422_v53 = vadd.f32 %v3419_v51, %v4961_v63 }
0x1e21   : > { %v3425_v54 = vsel %vm800_vm1, %v3422_v53, 0.0 }
0x1e22   : > { %3426 = vadd.xlane.f32.xlu1 %v3425_v54 }
0x1eab   : > { %v3427_v55 = vpop.xlane.xlu1 %3426 }
0x1eac   : > { %v3428_v56 = vmul.f32 0.03125, %v3427_v55 }
0x1eae   : > { %v3429_v57 = vsub.f32 %v3422_v53, %v3428_v56 }
0x1eb0   : > { %v3430_v58 = vmul.f32 %v3429_v57, %v3429_v57 }
0x1eb2   : > { %v3431_v59 = vsel %vm800_vm1, %v3430_v58, 0.0 }
0x1eb3   : > { %3432 = vadd.xlane.f32.xlu0 %v3431_v59 }
0x1f3c   : > { %v3433_v60 = vpop.xlane.xlu0 %3432 }
0x1f3d   : > { %v3434_v61 = vmul.f32 0.03125, %v3433_v60 }
0x1f3f   : > { %v3435_v62 = vadd.f32 1e-06, %v3434_v61 }
0x1f41   : > { %4216 = vrsqrt.f32 %v3435_v62 }
0x1f4e   : > { %v4217_v0 = vpop.eup %4216 }
0x1f4f   : > { %v3437_v63 = vmul.f32 %v4217_v0, %v3429_v57 }
0x1f51   : > { %v3444_v4 = vmul.f32 %v3726_v1, %v3437_v63 }
0x1f53   : > { %v3451_v5 = vadd.f32 %v3727_v3, %v3444_v4 }
0x1f55   : > { %v3453_v6 = vrot.slane %v3451_v5, 1 }
0x1f57   : > { %v3455_v7 = vadd.f32 %v3453_v6, %v3451_v5 }
0x1f59   : > { %v3456_v16 = vmul.f32 0.5, %v3455_v7 }
0x1f5b   : > { %v3460_v8 = vsel %vm3459_vm8, %v3456_v16, 0.0 }
0x1f5c   : > { %3461 = vadd.xlane.f32.xlu1 %v3460_v8 }
0x1fe5   : > { %v3462_v9 = vpop.xlane.xlu1 %3461 }
0x1fe6   : > { %v3463_v10 = vmul.f32 0.03125, %v3462_v9 }
0x1fe8   : > { %v3464_v11 = vsub.f32 %v3456_v16, %v3463_v10 }
0x1fea   : > { %v3465_v12 = vmul.f32 %v3464_v11, %v3464_v11 }
0x1fec   : > { %v3466_v13 = vsel %vm3459_vm8, %v3465_v12, 0.0 }
0x1fed   : > { %3467 = vadd.xlane.f32.xlu1 %v3466_v13 }
0x2076   : > { %v3468_v18 = vpop.xlane.xlu1 %3467 }
0x2077   : > { %v3469_v19 = vmul.f32 0.03125, %v3468_v18 }
0x2079   : > { %v3470_v20 = vadd.f32 1e-06, %v3469_v19 }
0x207b   : > { %4218 = vrsqrt.f32 %v3470_v20 }
0x2088   : > { %v4219_v21 = vpop.eup %4218 }
0x2089   : > { %v3472_v23 = vmul.f32 %v4219_v21, %v3464_v11 }
0x208b   : > { %v3473_v25 = vmul.f32 %v3472_v23, %v3457_v22 }
0x208d   : > { %v3474_v26 = vadd.f32 %v3473_v25, %v3458_v24 }
0x208f   : > { %4118 = vmatmul.mubr.msk.f32.vlgmr.msra.gmra.mxu0 %vm840_vm3, %v3474_v26 }
0x214f   : > { %v3549_v27 = vpop.f32.mrf.mxu0 }
0x2150   : > { %v3550_v28 = vadd.f32 %v3549_v27, %v3479_v50 }
0x2151   : > { %v4119_v29 = vpop.f32.mrf.mxu0 }
0x2152   : > { %3554 = vst.msk [vmem:[%s675_s23] sm:$0x1] %vm3553_vm9, %v3550_v28 }
0x2153   : > { %4233 = shalt.err (!%p4230_p3)
}
0x2154   : > { %s4234_s22 = scalar_lea.hbm %s5100_s1, 16  ;;  %s4238_s30 = scalar_lea.hbm %s5219_s2, 32 }
0x2155   : > { %p4235_p4 = scmp.ne.s32.totalorder %s5100_s1, %s4234_s22  ;;  %p4239_p9 = scmp.lt.s32.totalorder %s5100_s1, %s5219_s2 }
0x2156   : > { %p4240_p10 = scmp.lt.s32.totalorder %s4238_s30, %s4234_s22 }
0x2157   : > { %p4236_p7 = pnand %p4235_p4, %p4449_p5 }
0x2158   : > { %p4241_p11 = por %p4240_p10, %p4239_p9 }
0x2159   : > { %p4237_p8 = pneg %p4236_p7 }
0x215b   : > { %p4242_p12 = pnand %p4241_p11, %p4237_p8 }
0x215d   : > { %4245 = shalt.err (!%p4242_p12)
}
0x215e   : > { %4120 = dma.vmem_to_hbm [thread:$0]  (%p4449_p5), %s3569_s0, 16, %s5100_s1, %s3556_s5  }
0x215f PF: > { %s5220_s7 = sld [smem:[#allocation7_spill]] }
0x2160   : > { %s5221_s4 = sld [smem:[#allocation5_spill]] }
0x2165   : > { %p4126_p13 = scmp.ge.s32.totalorder %s5220_s7, 2 }
0x2166   : > { %s3580_s24 = sand.u32 1, %s5221_s4  }
0x2167   : > { %p4123_p0 = pnand %p4126_p13, %p4453_p6  ;;  %s3581_s25 = scalar_lea.sflag [#allocation3], %s3580_s24 }
0x2169   : > { %p4124_p1 = pneg %p4123_p0 }
0x216b   : > { %4263 = dma.done.wait (%p4124_p1), %s3581_s25, 16  }
0x216c   : > { %4265 = vsyncadd (%p4124_p1), %s3581_s25, 4294967280  ;;  %s5223_s30 = sld [smem:[#allocation8_spill]]  ;;  %s5226_s3 = smov %s4272_s28 }
0x216d   : > { %s5224_s22 = sld [smem:[#allocation6_spill]] }
0x216e   : > { %s5225_s29 = sld [smem:[#allocation9_spill]] }
0x2172   : > { %p32_p2 = scmp.ge.s32.totalorder %s5223_s30, 4  }
0x2173   : > { %s5227_s28 = smov %s5224_s22 }
0x2174   :  { %34 = sbr.rel (!%p32_p2) target bundleno = 13 (0xd), region = 155 }
0x2179   :  { %3585 = vsyncpa [#allocation3], 1 }
0x217a   :  { %3587 = vsyncpa [#allocation3 + $0x1], 1 }

</bundles_post_ra>
